<compile_context>
chip_gen: v7x
topology: tpu7x:2x2x1
jax: 0.10.0
libtpu: 0.0.40
codegen_flags: <defaults>
</compile_context>

<pallas_src>
import math
import random
import functools

import jax
import jax.numpy as jnp
from jax.experimental import pallas as pl
from jax.experimental.pallas import tpu as pltpu


# ------------------------------- Pallas kernels -------------------------------------

def _gru_gates(x_proj, h_proj, h, H):
    """Packed-gate PyTorch GRU update; x_proj / h_proj are (B, 3H), gate order r,z,n."""
    r = jax.nn.sigmoid(x_proj[:, :H] + h_proj[:, :H])
    z = jax.nn.sigmoid(x_proj[:, H:2 * H] + h_proj[:, H:2 * H])
    n = jnp.tanh(x_proj[:, 2 * H:] + r * h_proj[:, 2 * H:])
    return (1.0 - z) * n + z * h


def gru_scan_kernel(xproj_ref, wh_ref, bh_ref, out_ref, h_scr, *, H):
    """One GRU direction over the whole sequence: grid=(S,), hidden carried in VMEM scratch.
    xproj_ref already contains x @ W_i + b_i (all 3 gates), precomputed outside the loop."""
    t = pl.program_id(0)

    @pl.when(t == 0)
    def _():
        h_scr[...] = jnp.zeros_like(h_scr)

    h = h_scr[...]                                           # (B, H)
    x_proj = xproj_ref[0]                                    # (B, 3H)
    h_proj = jnp.dot(h, wh_ref[...], preferred_element_type=jnp.float32) + bh_ref[...]
    h_new = _gru_gates(x_proj, h_proj, h, H)
    h_scr[...] = h_new
    out_ref[0] = h_new


def linear_kernel(x_ref, w_ref, b_ref, o_ref, *, activation=None):
    y = jnp.dot(x_ref[...], w_ref[...], preferred_element_type=jnp.float32) + b_ref[...]
    if activation == "tanh":
        y = jnp.tanh(y)
    o_ref[...] = y


def decoder_kernel(tf_ref,                                   # SMEM [T] teacher-forcing mask
                   trg_ref, h0_ref, enc_ref, encproj_ref, emb_ref,
                   wah_ref, v_ref,
                   wie_ref, wic_ref, bi_ref, whh_ref, bhh_ref,
                   fwh_ref, fwc_ref, fwe_ref, fb_ref,
                   out_ref, tok_scr, hid_scr, *, H, V):
    """One decoder step per grid iteration; hidden + next token carried in VMEM scratch."""
    i = pl.program_id(0)
    B = hid_scr.shape[0]

    @pl.when(i == 0)
    def _():
        tok_scr[...] = trg_ref[0]                            # dec_inp = trg[0]
        hid_scr[...] = h0_ref[...]

    tok = tok_scr[...]                                       # (B, 1) int32
    hidden = hid_scr[...]                                    # (B, H)

    # embedding lookup as one-hot @ table (stays in VMEM, no dynamic gather)
    iota_v = jax.lax.broadcasted_iota(jnp.int32, (B, V), 1)
    onehot = (iota_v == tok).astype(jnp.float32)             # (B, V)
    embedded = jnp.dot(onehot, emb_ref[...], preferred_element_type=jnp.float32)   # (B, De)

    # Bahdanau attention, batched; enc @ W_ae + b_a was hoisted out of the loop.
    hid_proj = jnp.dot(hidden, wah_ref[...], preferred_element_type=jnp.float32)   # (B, H)
    energy = jnp.tanh(encproj_ref[...] + hid_proj[:, None, :])                     # (B, S, H)
    score = jnp.sum(energy * v_ref[...][None], axis=-1)                            # (B, S)
    score = score - jnp.max(score, axis=-1, keepdims=True)
    e = jnp.exp(score)
    a = e / jnp.sum(e, axis=-1, keepdims=True)                                     # (B, S)
    weighted = jnp.einsum("bqs,bse->bqe", a[:, None, :], enc_ref[...],
                          preferred_element_type=jnp.float32)[:, 0, :]             # (B, E2)

    # GRU cell, packed gates; rnn_in concat folded into split input matmuls.
    x_proj = (jnp.dot(embedded, wie_ref[...], preferred_element_type=jnp.float32)
              + jnp.dot(weighted, wic_ref[...], preferred_element_type=jnp.float32)
              + bi_ref[...])                                                        # (B, 3H)
    h_proj = jnp.dot(hidden, whh_ref[...], preferred_element_type=jnp.float32) + bhh_ref[...]
    h_new = _gru_gates(x_proj, h_proj, hidden, H)                                   # (B, H)

    # fc_out on concat([h_new, weighted, embedded]) via split matmuls.
    pred = (jnp.dot(h_new, fwh_ref[...], preferred_element_type=jnp.float32)
            + jnp.dot(weighted, fwc_ref[...], preferred_element_type=jnp.float32)
            + jnp.dot(embedded, fwe_ref[...], preferred_element_type=jnp.float32)
            + fb_ref[...])                                                          # (B, V)
    out_ref[0] = pred

    # next input token: argmax(pred) unless teacher forcing (trg[i], as in the reference loop)
    m = jnp.max(pred, axis=-1, keepdims=True)
    idx = jax.lax.broadcasted_iota(jnp.int32, (B, V), 1).astype(jnp.float32)
    top1 = jnp.min(jnp.where(pred == m, idx, jnp.float32(V)),
                   axis=-1, keepdims=True).astype(jnp.int32)                        # (B, 1)
    tf = tf_ref[i]
    tok_scr[...] = tf * trg_ref[0] + (1 - tf) * top1
    hid_scr[...] = h_new


# ------------------------------- Pallas wrappers -------------------------------------

def _vmem_spec():
    return pl.BlockSpec(memory_space=pltpu.MemorySpace.VMEM)


def linear(x, w, b, activation=None):
    return pl.pallas_call(
        functools.partial(linear_kernel, activation=activation),
        in_specs=[_vmem_spec()] * 3,
        out_specs=_vmem_spec(),
        out_shape=jax.ShapeDtypeStruct((x.shape[0], w.shape[1]), jnp.float32),
    )(x, w, b)


def gru_scan(x_proj, wh, bh, *, reverse=False):
    S, B, H3 = x_proj.shape
    H = H3 // 3
    tmap = (lambda t: (S - 1 - t, 0, 0)) if reverse else (lambda t: (t, 0, 0))
    return pl.pallas_call(
        functools.partial(gru_scan_kernel, H=H),
        grid=(S,),
        in_specs=[pl.BlockSpec((1, B, H3), tmap),
                  pl.BlockSpec((H, H3), lambda t: (0, 0)),
                  pl.BlockSpec((1, H3), lambda t: (0, 0))],
        out_specs=pl.BlockSpec((1, B, H), tmap),
        out_shape=jax.ShapeDtypeStruct((S, B, H), jnp.float32),
        scratch_shapes=[pltpu.VMEM((B, H), jnp.float32)],
        compiler_params=pltpu.CompilerParams(dimension_semantics=("arbitrary",)),
    )(x_proj, wh, bh)


def decoder_run(trg, tf_mask, hidden0, enc_bse, p):
    T, B = trg.shape
    Hd = hidden0.shape[1]
    _, S, E2 = enc_bse.shape
    V, De = p["emb"].shape

    # decoder-invariant projection of encoder outputs, computed ONCE (classic Bahdanau hoist)
    enc_proj = linear(enc_bse.reshape(B * S, E2), p["wae"], p["ba"]).reshape(B, S, Hd)
    trg3 = trg[:, :, None]                                   # [T, B, 1] int32

    cmap2 = lambda i, tf: (0, 0)
    cmap3 = lambda i, tf: (0, 0, 0)
    grid_spec = pltpu.PrefetchScalarGridSpec(
        num_scalar_prefetch=1,
        grid=(T,),
        in_specs=[
            pl.BlockSpec((1, B, 1), lambda i, tf: (i, 0, 0)),    # trg tokens (per step)
            pl.BlockSpec((B, Hd), cmap2),                        # encoder final hidden
            pl.BlockSpec((B, S, E2), cmap3),                     # encoder outputs (batch-major)
            pl.BlockSpec((B, S, Hd), cmap3),                     # enc @ W_ae + b_a
            pl.BlockSpec((V, De), cmap2),                        # decoder embedding table
            pl.BlockSpec((Hd, Hd), cmap2),                       # attention W (hidden part)
            pl.BlockSpec((1, Hd), cmap2),                        # attention v
            pl.BlockSpec((De, 3 * Hd), cmap2),                   # GRU W_i (embedded half)
            pl.BlockSpec((E2, 3 * Hd), cmap2),                   # GRU W_i (context half)
            pl.BlockSpec((1, 3 * Hd), cmap2),                    # GRU b_i
            pl.BlockSpec((Hd, 3 * Hd), cmap2),                   # GRU W_h
            pl.BlockSpec((1, 3 * Hd), cmap2),                    # GRU b_h
            pl.BlockSpec((Hd, V), cmap2),                        # fc_out (h part)
            pl.BlockSpec((E2, V), cmap2),                        # fc_out (context part)
            pl.BlockSpec((De, V), cmap2),                        # fc_out (embedded part)
            pl.BlockSpec((1, V), cmap2),                         # fc_out bias
        ],
        out_specs=pl.BlockSpec((1, B, V), lambda i, tf: (i, 0, 0)),
        scratch_shapes=[pltpu.VMEM((B, 1), jnp.int32),           # carried next-input token
                        pltpu.VMEM((B, Hd), jnp.float32)],       # carried hidden state
    )
    return pl.pallas_call(
        functools.partial(decoder_kernel, H=Hd, V=V),
        grid_spec=grid_spec,
        out_shape=jax.ShapeDtypeStruct((T, B, V), jnp.float32),
        compiler_params=pltpu.CompilerParams(dimension_semantics=("arbitrary",)),
    )(tf_mask, trg3, hidden0, enc_bse, enc_proj, p["emb"], p["wah"], p["v"],
      p["wie"], p["wic"], p["bi"], p["wh"], p["bh"],
      p["fw_h"], p["fw_c"], p["fw_e"], p["fb"])


# ------------------------------- Model ------------------------------------------------

def init_gru(key, in_dim, hid):
    ks = jax.random.split(key, 4)
    s = 1.0 / math.sqrt(hid)
    u = lambda k, sh: jax.random.uniform(k, sh, jnp.float32, -s, s)
    return dict(wi=u(ks[0], (in_dim, 3 * hid)), wh=u(ks[1], (hid, 3 * hid)),
                bi=u(ks[2], (1, 3 * hid)), bh=u(ks[3], (1, 3 * hid)))


def init_params(key, input_dim, output_dim, enc_emb, dec_emb, enc_hid, dec_hid):
    ks = jax.random.split(key, 18)
    u = lambda k, sh, s: jax.random.uniform(k, sh, jnp.float32, -s, s)
    gru_f = init_gru(ks[1], enc_emb, enc_hid)
    gru_b = init_gru(ks[2], enc_emb, enc_hid)
    enc = dict(
        emb=u(ks[0], (input_dim, enc_emb), 0.1),
        # packed input-to-hidden projection for BOTH directions: [E, 6H] (one matmul / sequence)
        wi_fb=jnp.concatenate([gru_f["wi"], gru_b["wi"]], axis=1),
        bi_fb=jnp.concatenate([gru_f["bi"], gru_b["bi"]], axis=1),
        wh_f=gru_f["wh"], bh_f=gru_f["bh"],
        wh_b=gru_b["wh"], bh_b=gru_b["bh"],
        fc_w=u(ks[3], (2 * enc_hid, dec_hid), 1.0 / math.sqrt(2 * enc_hid)),
        fc_b=u(ks[4], (1, dec_hid), 1.0 / math.sqrt(2 * enc_hid)),
    )
    e2 = 2 * enc_hid
    attn_in = dec_hid + e2
    fc_in = dec_hid + e2 + dec_emb
    sg = 1.0 / math.sqrt(dec_hid)
    dec = dict(
        emb=u(ks[5], (output_dim, dec_emb), 0.1),
        wah=u(ks[6], (dec_hid, dec_hid), 1.0 / math.sqrt(attn_in)),
        wae=u(ks[7], (e2, dec_hid), 1.0 / math.sqrt(attn_in)),
        ba=u(ks[8], (1, dec_hid), 1.0 / math.sqrt(attn_in)),
        v=u(ks[9], (1, dec_hid), 1.0 / math.sqrt(dec_hid)),
        wie=u(ks[10], (dec_emb, 3 * dec_hid), sg),
        wic=u(ks[11], (e2, 3 * dec_hid), sg),
        bi=u(ks[12], (1, 3 * dec_hid), sg),
        wh=u(ks[13], (dec_hid, 3 * dec_hid), sg),
        bh=u(ks[14], (1, 3 * dec_hid), sg),
        fw_h=u(ks[15], (dec_hid, output_dim), 1.0 / math.sqrt(fc_in)),
        fw_c=u(ks[16], (e2, output_dim), 1.0 / math.sqrt(fc_in)),
        fw_e=u(ks[17], (dec_emb, output_dim), 1.0 / math.sqrt(fc_in)),
        fb=jnp.zeros((1, output_dim), jnp.float32),
    )
    return enc, dec


def encoder_forward(src, p):
    S, B = src.shape
    H = p["wh_f"].shape[0]
    emb = p["emb"][src]                                              # [S, B, E]   (glue gather)
    E = emb.shape[-1]
    # non-recurrent half of the GRU (both directions, all timesteps) in ONE matmul
    xproj = linear(emb.reshape(S * B, E), p["wi_fb"], p["bi_fb"]).reshape(S, B, 6 * H)
    xf, xb = xproj[..., :3 * H], xproj[..., 3 * H:]
    fwd = gru_scan(xf, p["wh_f"], p["bh_f"], reverse=False)          # [S, B, H]
    bwd = gru_scan(xb, p["wh_b"], p["bh_b"], reverse=True)           # [S, B, H]
    enc_bse = jnp.concatenate([fwd, bwd], axis=2).transpose(1, 0, 2)  # [B, S, 2H]
    hidden = linear(jnp.concatenate([fwd[-1], bwd[0]], axis=1),
                    p["fc_w"], p["fc_b"], activation="tanh")         # [B, Hd]
    return enc_bse, hidden


@jax.jit
def seq2seq_forward(src, trg, tf_mask, enc_params, dec_params):
    enc_bse, hidden = encoder_forward(src, enc_params)
    return decoder_run(trg, tf_mask, hidden, enc_bse, dec_params)    # [T, B, OUTPUT_DIM]


# ------------------------------- main --------------------------------------------------

if __name__ == "__main__":
    INPUT_DIM, OUTPUT_DIM = 12, 10
    ENC_EMB, DEC_EMB = 16, 16
    ENC_HID, DEC_HID = 32, 32
    SRC_LEN, TRG_LEN, BATCH = 6, 5, 4

    random.seed(0)                                    # deterministic teacher forcing
    key = jax.random.PRNGKey(0)
    k_par, k_src, k_trg = jax.random.split(key, 3)

    enc_params, dec_params = init_params(
        k_par, INPUT_DIM, OUTPUT_DIM, ENC_EMB, DEC_EMB, ENC_HID, DEC_HID)

    src = jax.random.randint(k_src, (SRC_LEN, BATCH), 0, INPUT_DIM, dtype=jnp.int32)
    trg = jax.random.randint(k_trg, (TRG_LEN, BATCH), 0, OUTPUT_DIM, dtype=jnp.int32)

    # host-side per-step coin flips (same semantics as torch's random.random() in the loop),
    # precomputed so the whole forward is jittable.
    teacher_forcing_ratio = 0.5
    tf_mask = jnp.asarray([1 if random.random() < teacher_forcing_ratio else 0
                           for _ in range(TRG_LEN)], dtype=jnp.int32)

    outputs = seq2seq_forward(src, trg, tf_mask, enc_params, dec_params)
    outputs = jax.block_until_ready(outputs)
    assert outputs.shape == (TRG_LEN, BATCH, OUTPUT_DIM)
    assert bool(jnp.all(jnp.isfinite(outputs)))
    print("KERNEL_OK")
</pallas_src>

<mosaic_0001>
module attributes {stable_mosaic.version = 11 : i64} {
  func.func @linear_kernel(%arg0: memref<24x16xf32, #tpu.memory_space<vmem>>, %arg1: memref<16x192xf32, #tpu.memory_space<vmem>>, %arg2: memref<1x192xf32, #tpu.memory_space<vmem>>, %arg3: memref<24x192xf32, #tpu.memory_space<vmem>>) attributes {dimension_semantics = [], scalar_prefetch = 0 : i64, scratch_operands = 0 : i64, tpu.core_type = #tpu.core_type<tc>} {
    %c0 = arith.constant 0 : index
    %c0_0 = arith.constant 0 : index
    %0 = vector.load %arg0[%c0, %c0_0] : memref<24x16xf32, #tpu.memory_space<vmem>>, vector<24x16xf32>
    %c0_1 = arith.constant 0 : index
    %c0_2 = arith.constant 0 : index
    %1 = vector.load %arg1[%c0_1, %c0_2] : memref<16x192xf32, #tpu.memory_space<vmem>>, vector<16x192xf32>
    %cst = arith.constant dense<0.000000e+00> : vector<24x192xf32>
    %2 = tpu.matmul %0, %1, %cst {dimension_numbers = #tpu.dot_dimension_numbers<[1], [0], [0], [1], [0, 0, 1, 1], [], []>} : vector<24x16xf32>, vector<16x192xf32>, vector<24x192xf32> -> vector<24x192xf32>
    %c0_3 = arith.constant 0 : index
    %c0_4 = arith.constant 0 : index
    %3 = vector.load %arg2[%c0_3, %c0_4] : memref<1x192xf32, #tpu.memory_space<vmem>>, vector<1x192xf32>
    %4 = vector.broadcast %3 : vector<1x192xf32> to vector<24x192xf32>
    %5 = arith.addf %2, %4 : vector<24x192xf32>
    %c0_5 = arith.constant 0 : index
    %c0_6 = arith.constant 0 : index
    %6 = vector.load %arg3[%c0_5, %c0_6] : memref<24x192xf32, #tpu.memory_space<vmem>>, vector<24x192xf32>
    tpu.vector_store %arg3[%c0_5, %c0_6], %5 {strides = array<i32>} : memref<24x192xf32, #tpu.memory_space<vmem>>, vector<24x192xf32>,
    return
  }
}

module attributes {stable_mosaic.version = 11 : i64} {
  func.func @gru_scan_kernel(%arg0: i32, %arg1: memref<1x4x96xf32, #tpu.memory_space<vmem>>, %arg2: memref<32x96xf32, #tpu.memory_space<vmem>>, %arg3: memref<1x96xf32, #tpu.memory_space<vmem>>, %arg4: memref<1x4x32xf32, #tpu.memory_space<vmem>>, %arg5: memref<4x32xf32, #tpu.memory_space<vmem>>) attributes {dimension_semantics = [#tpu.dimension_semantics<arbitrary>], iteration_bounds = array<i64: 6>, scalar_prefetch = 0 : i64, scratch_operands = 1 : i64, tpu.core_type = #tpu.core_type<tc>, window_params = [{transform_indices = @transform_0, window_bounds = array<i64: 1, 4, 96>}, {pipeline_mode = #tpu.pipeline_mode<synchronous>, transform_indices = @transform_1, window_bounds = array<i64: 32, 96>}, {pipeline_mode = #tpu.pipeline_mode<synchronous>, transform_indices = @transform_2, window_bounds = array<i64: 1, 96>}, {transform_indices = @transform_3, window_bounds = array<i64: 1, 4, 32>}]} {
    %c0_i32 = arith.constant 0 : i32
    %0 = arith.cmpi eq, %arg0, %c0_i32 : i32
    %1 = arith.extui %0 : i1 to i32
    %c0_i32_0 = arith.constant 0 : i32
    %2 = arith.cmpi ne, %1, %c0_i32_0 : i32
    scf.if %2 {
      %cst_17 = arith.constant 0.000000e+00 : f32
      %41 = vector.broadcast %cst_17 : f32 to vector<4x32xf32>
      %c0_18 = arith.constant 0 : index
      %c0_19 = arith.constant 0 : index
      %42 = vector.load %arg5[%c0_18, %c0_19] : memref<4x32xf32, #tpu.memory_space<vmem>>, vector<4x32xf32>
      tpu.vector_store %arg5[%c0_18, %c0_19], %41 {strides = array<i32>} : memref<4x32xf32, #tpu.memory_space<vmem>>, vector<4x32xf32>,
    } else {
    }
    %c0 = arith.constant 0 : index
    %c0_1 = arith.constant 0 : index
    %3 = vector.load %arg5[%c0, %c0_1] : memref<4x32xf32, #tpu.memory_space<vmem>>, vector<4x32xf32>
    %c0_2 = arith.constant 0 : index
    %c0_3 = arith.constant 0 : index
    %c0_4 = arith.constant 0 : index
    %4 = vector.load %arg1[%c0_2, %c0_3, %c0_4] : memref<1x4x96xf32, #tpu.memory_space<vmem>>, vector<1x4x96xf32>
    %5 = vector.shape_cast %4 : vector<1x4x96xf32> to vector<4x96xf32>
    %c0_5 = arith.constant 0 : index
    %c0_6 = arith.constant 0 : index
    %6 = vector.load %arg2[%c0_5, %c0_6] : memref<32x96xf32, #tpu.memory_space<vmem>>, vector<32x96xf32>
    %cst = arith.constant dense<0.000000e+00> : vector<4x96xf32>
    %7 = tpu.matmul %3, %6, %cst {dimension_numbers = #tpu.dot_dimension_numbers<[1], [0], [0], [1], [0, 0, 1, 1], [], []>} : vector<4x32xf32>, vector<32x96xf32>, vector<4x96xf32> -> vector<4x96xf32>
    %c0_7 = arith.constant 0 : index
    %c0_8 = arith.constant 0 : index
    %8 = vector.load %arg3[%c0_7, %c0_8] : memref<1x96xf32, #tpu.memory_space<vmem>>, vector<1x96xf32>
    %9 = vector.broadcast %8 : vector<1x96xf32> to vector<4x96xf32>
    %10 = arith.addf %7, %9 : vector<4x96xf32>
    %11 = vector.extract_strided_slice %5 {offsets = [0, 0], sizes = [4, 32], strides = [1, 1]} : vector<4x96xf32> to vector<4x32xf32>
    %12 = vector.extract_strided_slice %10 {offsets = [0, 0], sizes = [4, 32], strides = [1, 1]} : vector<4x96xf32> to vector<4x32xf32>
    %13 = arith.addf %11, %12 : vector<4x32xf32>
    %14 = arith.negf %13 : vector<4x32xf32>
    %15 = math.exp %14 : vector<4x32xf32>
    %cst_9 = arith.constant 1.000000e+00 : f32
    %16 = vector.broadcast %cst_9 : f32 to vector<4x32xf32>
    %17 = arith.addf %16, %15 : vector<4x32xf32>
    %18 = arith.divf %16, %17 : vector<4x32xf32>
    %19 = vector.extract_strided_slice %5 {offsets = [0, 32], sizes = [4, 32], strides = [1, 1]} : vector<4x96xf32> to vector<4x32xf32>
    %20 = vector.extract_strided_slice %10 {offsets = [0, 32], sizes = [4, 32], strides = [1, 1]} : vector<4x96xf32> to vector<4x32xf32>
    %21 = arith.addf %19, %20 : vector<4x32xf32>
    %22 = arith.negf %21 : vector<4x32xf32>
    %23 = math.exp %22 : vector<4x32xf32>
    %cst_10 = arith.constant 1.000000e+00 : f32
    %24 = vector.broadcast %cst_10 : f32 to vector<4x32xf32>
    %25 = arith.addf %24, %23 : vector<4x32xf32>
    %26 = arith.divf %24, %25 : vector<4x32xf32>
    %27 = vector.extract_strided_slice %5 {offsets = [0, 64], sizes = [4, 32], strides = [1, 1]} : vector<4x96xf32> to vector<4x32xf32>
    %28 = vector.extract_strided_slice %10 {offsets = [0, 64], sizes = [4, 32], strides = [1, 1]} : vector<4x96xf32> to vector<4x32xf32>
    %29 = arith.mulf %18, %28 : vector<4x32xf32>
    %30 = arith.addf %27, %29 : vector<4x32xf32>
    %31 = math.tanh %30 : vector<4x32xf32>
    %cst_11 = arith.constant 1.000000e+00 : f32
    %32 = vector.broadcast %cst_11 : f32 to vector<4x32xf32>
    %33 = arith.subf %32, %26 : vector<4x32xf32>
    %34 = arith.mulf %33, %31 : vector<4x32xf32>
    %35 = arith.mulf %26, %3 : vector<4x32xf32>
    %36 = arith.addf %34, %35 : vector<4x32xf32>
    %c0_12 = arith.constant 0 : index
    %c0_13 = arith.constant 0 : index
    %37 = vector.load %arg5[%c0_12, %c0_13] : memref<4x32xf32, #tpu.memory_space<vmem>>, vector<4x32xf32>
    tpu.vector_store %arg5[%c0_12, %c0_13], %36 {strides = array<i32>} : memref<4x32xf32, #tpu.memory_space<vmem>>, vector<4x32xf32>,
    %c0_14 = arith.constant 0 : index
    %c0_15 = arith.constant 0 : index
    %c0_16 = arith.constant 0 : index
    %38 = vector.load %arg4[%c0_14, %c0_15, %c0_16] : memref<1x4x32xf32, #tpu.memory_space<vmem>>, vector<1x4x32xf32>
    %39 = vector.shape_cast %38 : vector<1x4x32xf32> to vector<4x32xf32>
    %40 = vector.shape_cast %36 : vector<4x32xf32> to vector<1x4x32xf32>
    tpu.vector_store %arg4[%c0_14, %c0_15, %c0_16], %40 {strides = array<i32>} : memref<1x4x32xf32, #tpu.memory_space<vmem>>, vector<1x4x32xf32>,
    return
  }
  func.func @transform_0(%arg0: i32) -> (i32, i32, i32) {
    %c0_i32 = arith.constant 0 : i32
    %c0_i32_0 = arith.constant 0 : i32
    %c0_i32_1 = arith.constant 0 : i32
    return %arg0, %c0_i32, %c0_i32_0 : i32, i32, i32
  }
  func.func @transform_1(%arg0: i32) -> (i32, i32) {
    %c0_i32 = arith.constant 0 : i32
    %c0_i32_0 = arith.constant 0 : i32
    %c0_i32_1 = arith.constant 0 : i32
    return %c0_i32, %c0_i32_0 : i32, i32
  }
  func.func @transform_2(%arg0: i32) -> (i32, i32) {
    %c0_i32 = arith.constant 0 : i32
    %c0_i32_0 = arith.constant 0 : i32
    %c0_i32_1 = arith.constant 0 : i32
    return %c0_i32, %c0_i32_0 : i32, i32
  }
  func.func @transform_3(%arg0: i32) -> (i32, i32, i32) {
    %c0_i32 = arith.constant 0 : i32
    %c0_i32_0 = arith.constant 0 : i32
    %c0_i32_1 = arith.constant 0 : i32
    return %arg0, %c0_i32, %c0_i32_0 : i32, i32, i32
  }
}

module attributes {stable_mosaic.version = 11 : i64} {
  func.func @gru_scan_kernel(%arg0: i32, %arg1: memref<1x4x96xf32, #tpu.memory_space<vmem>>, %arg2: memref<32x96xf32, #tpu.memory_space<vmem>>, %arg3: memref<1x96xf32, #tpu.memory_space<vmem>>, %arg4: memref<1x4x32xf32, #tpu.memory_space<vmem>>, %arg5: memref<4x32xf32, #tpu.memory_space<vmem>>) attributes {dimension_semantics = [#tpu.dimension_semantics<arbitrary>], iteration_bounds = array<i64: 6>, scalar_prefetch = 0 : i64, scratch_operands = 1 : i64, tpu.core_type = #tpu.core_type<tc>, window_params = [{transform_indices = @transform_0, window_bounds = array<i64: 1, 4, 96>}, {pipeline_mode = #tpu.pipeline_mode<synchronous>, transform_indices = @transform_1, window_bounds = array<i64: 32, 96>}, {pipeline_mode = #tpu.pipeline_mode<synchronous>, transform_indices = @transform_2, window_bounds = array<i64: 1, 96>}, {transform_indices = @transform_3, window_bounds = array<i64: 1, 4, 32>}]} {
    %c0_i32 = arith.constant 0 : i32
    %0 = arith.cmpi eq, %arg0, %c0_i32 : i32
    %1 = arith.extui %0 : i1 to i32
    %c0_i32_0 = arith.constant 0 : i32
    %2 = arith.cmpi ne, %1, %c0_i32_0 : i32
    scf.if %2 {
      %cst_17 = arith.constant 0.000000e+00 : f32
      %41 = vector.broadcast %cst_17 : f32 to vector<4x32xf32>
      %c0_18 = arith.constant 0 : index
      %c0_19 = arith.constant 0 : index
      %42 = vector.load %arg5[%c0_18, %c0_19] : memref<4x32xf32, #tpu.memory_space<vmem>>, vector<4x32xf32>
      tpu.vector_store %arg5[%c0_18, %c0_19], %41 {strides = array<i32>} : memref<4x32xf32, #tpu.memory_space<vmem>>, vector<4x32xf32>,
    } else {
    }
    %c0 = arith.constant 0 : index
    %c0_1 = arith.constant 0 : index
    %3 = vector.load %arg5[%c0, %c0_1] : memref<4x32xf32, #tpu.memory_space<vmem>>, vector<4x32xf32>
    %c0_2 = arith.constant 0 : index
    %c0_3 = arith.constant 0 : index
    %c0_4 = arith.constant 0 : index
    %4 = vector.load %arg1[%c0_2, %c0_3, %c0_4] : memref<1x4x96xf32, #tpu.memory_space<vmem>>, vector<1x4x96xf32>
    %5 = vector.shape_cast %4 : vector<1x4x96xf32> to vector<4x96xf32>
    %c0_5 = arith.constant 0 : index
    %c0_6 = arith.constant 0 : index
    %6 = vector.load %arg2[%c0_5, %c0_6] : memref<32x96xf32, #tpu.memory_space<vmem>>, vector<32x96xf32>
    %cst = arith.constant dense<0.000000e+00> : vector<4x96xf32>
    %7 = tpu.matmul %3, %6, %cst {dimension_numbers = #tpu.dot_dimension_numbers<[1], [0], [0], [1], [0, 0, 1, 1], [], []>} : vector<4x32xf32>, vector<32x96xf32>, vector<4x96xf32> -> vector<4x96xf32>
    %c0_7 = arith.constant 0 : index
    %c0_8 = arith.constant 0 : index
    %8 = vector.load %arg3[%c0_7, %c0_8] : memref<1x96xf32, #tpu.memory_space<vmem>>, vector<1x96xf32>
    %9 = vector.broadcast %8 : vector<1x96xf32> to vector<4x96xf32>
    %10 = arith.addf %7, %9 : vector<4x96xf32>
    %11 = vector.extract_strided_slice %5 {offsets = [0, 0], sizes = [4, 32], strides = [1, 1]} : vector<4x96xf32> to vector<4x32xf32>
    %12 = vector.extract_strided_slice %10 {offsets = [0, 0], sizes = [4, 32], strides = [1, 1]} : vector<4x96xf32> to vector<4x32xf32>
    %13 = arith.addf %11, %12 : vector<4x32xf32>
    %14 = arith.negf %13 : vector<4x32xf32>
    %15 = math.exp %14 : vector<4x32xf32>
    %cst_9 = arith.constant 1.000000e+00 : f32
    %16 = vector.broadcast %cst_9 : f32 to vector<4x32xf32>
    %17 = arith.addf %16, %15 : vector<4x32xf32>
    %18 = arith.divf %16, %17 : vector<4x32xf32>
    %19 = vector.extract_strided_slice %5 {offsets = [0, 32], sizes = [4, 32], strides = [1, 1]} : vector<4x96xf32> to vector<4x32xf32>
    %20 = vector.extract_strided_slice %10 {offsets = [0, 32], sizes = [4, 32], strides = [1, 1]} : vector<4x96xf32> to vector<4x32xf32>
    %21 = arith.addf %19, %20 : vector<4x32xf32>
    %22 = arith.negf %21 : vector<4x32xf32>
    %23 = math.exp %22 : vector<4x32xf32>
    %cst_10 = arith.constant 1.000000e+00 : f32
    %24 = vector.broadcast %cst_10 : f32 to vector<4x32xf32>
    %25 = arith.addf %24, %23 : vector<4x32xf32>
    %26 = arith.divf %24, %25 : vector<4x32xf32>
    %27 = vector.extract_strided_slice %5 {offsets = [0, 64], sizes = [4, 32], strides = [1, 1]} : vector<4x96xf32> to vector<4x32xf32>
    %28 = vector.extract_strided_slice %10 {offsets = [0, 64], sizes = [4, 32], strides = [1, 1]} : vector<4x96xf32> to vector<4x32xf32>
    %29 = arith.mulf %18, %28 : vector<4x32xf32>
    %30 = arith.addf %27, %29 : vector<4x32xf32>
    %31 = math.tanh %30 : vector<4x32xf32>
    %cst_11 = arith.constant 1.000000e+00 : f32
    %32 = vector.broadcast %cst_11 : f32 to vector<4x32xf32>
    %33 = arith.subf %32, %26 : vector<4x32xf32>
    %34 = arith.mulf %33, %31 : vector<4x32xf32>
    %35 = arith.mulf %26, %3 : vector<4x32xf32>
    %36 = arith.addf %34, %35 : vector<4x32xf32>
    %c0_12 = arith.constant 0 : index
    %c0_13 = arith.constant 0 : index
    %37 = vector.load %arg5[%c0_12, %c0_13] : memref<4x32xf32, #tpu.memory_space<vmem>>, vector<4x32xf32>
    tpu.vector_store %arg5[%c0_12, %c0_13], %36 {strides = array<i32>} : memref<4x32xf32, #tpu.memory_space<vmem>>, vector<4x32xf32>,
    %c0_14 = arith.constant 0 : index
    %c0_15 = arith.constant 0 : index
    %c0_16 = arith.constant 0 : index
    %38 = vector.load %arg4[%c0_14, %c0_15, %c0_16] : memref<1x4x32xf32, #tpu.memory_space<vmem>>, vector<1x4x32xf32>
    %39 = vector.shape_cast %38 : vector<1x4x32xf32> to vector<4x32xf32>
    %40 = vector.shape_cast %36 : vector<4x32xf32> to vector<1x4x32xf32>
    tpu.vector_store %arg4[%c0_14, %c0_15, %c0_16], %40 {strides = array<i32>} : memref<1x4x32xf32, #tpu.memory_space<vmem>>, vector<1x4x32xf32>,
    return
  }
  func.func @transform_0(%arg0: i32) -> (i32, i32, i32) {
    %c5_i32 = arith.constant 5 : i32
    %0 = arith.subi %c5_i32, %arg0 : i32
    %c0_i32 = arith.constant 0 : i32
    %c0_i32_0 = arith.constant 0 : i32
    %c0_i32_1 = arith.constant 0 : i32
    return %0, %c0_i32, %c0_i32_0 : i32, i32, i32
  }
  func.func @transform_1(%arg0: i32) -> (i32, i32) {
    %c0_i32 = arith.constant 0 : i32
    %c0_i32_0 = arith.constant 0 : i32
    %c0_i32_1 = arith.constant 0 : i32
    return %c0_i32, %c0_i32_0 : i32, i32
  }
  func.func @transform_2(%arg0: i32) -> (i32, i32) {
    %c0_i32 = arith.constant 0 : i32
    %c0_i32_0 = arith.constant 0 : i32
    %c0_i32_1 = arith.constant 0 : i32
    return %c0_i32, %c0_i32_0 : i32, i32
  }
  func.func @transform_3(%arg0: i32) -> (i32, i32, i32) {
    %c5_i32 = arith.constant 5 : i32
    %0 = arith.subi %c5_i32, %arg0 : i32
    %c0_i32 = arith.constant 0 : i32
    %c0_i32_0 = arith.constant 0 : i32
    %c0_i32_1 = arith.constant 0 : i32
    return %0, %c0_i32, %c0_i32_0 : i32, i32, i32
  }
}

module attributes {stable_mosaic.version = 11 : i64} {
  func.func @linear_kernel(%arg0: memref<4x64xf32, #tpu.memory_space<vmem>>, %arg1: memref<64x32xf32, #tpu.memory_space<vmem>>, %arg2: memref<1x32xf32, #tpu.memory_space<vmem>>, %arg3: memref<4x32xf32, #tpu.memory_space<vmem>>) attributes {dimension_semantics = [], scalar_prefetch = 0 : i64, scratch_operands = 0 : i64, tpu.core_type = #tpu.core_type<tc>} {
    %c0 = arith.constant 0 : index
    %c0_0 = arith.constant 0 : index
    %0 = vector.load %arg0[%c0, %c0_0] : memref<4x64xf32, #tpu.memory_space<vmem>>, vector<4x64xf32>
    %c0_1 = arith.constant 0 : index
    %c0_2 = arith.constant 0 : index
    %1 = vector.load %arg1[%c0_1, %c0_2] : memref<64x32xf32, #tpu.memory_space<vmem>>, vector<64x32xf32>
    %cst = arith.constant dense<0.000000e+00> : vector<4x32xf32>
    %2 = tpu.matmul %0, %1, %cst {dimension_numbers = #tpu.dot_dimension_numbers<[1], [0], [0], [1], [0, 0, 1, 1], [], []>} : vector<4x64xf32>, vector<64x32xf32>, vector<4x32xf32> -> vector<4x32xf32>
    %c0_3 = arith.constant 0 : index
    %c0_4 = arith.constant 0 : index
    %3 = vector.load %arg2[%c0_3, %c0_4] : memref<1x32xf32, #tpu.memory_space<vmem>>, vector<1x32xf32>
    %4 = vector.broadcast %3 : vector<1x32xf32> to vector<4x32xf32>
    %5 = arith.addf %2, %4 : vector<4x32xf32>
    %6 = math.tanh %5 : vector<4x32xf32>
    %c0_5 = arith.constant 0 : index
    %c0_6 = arith.constant 0 : index
    %7 = vector.load %arg3[%c0_5, %c0_6] : memref<4x32xf32, #tpu.memory_space<vmem>>, vector<4x32xf32>
    tpu.vector_store %arg3[%c0_5, %c0_6], %6 {strides = array<i32>} : memref<4x32xf32, #tpu.memory_space<vmem>>, vector<4x32xf32>,
    return
  }
}

module attributes {stable_mosaic.version = 11 : i64} {
  func.func @linear_kernel(%arg0: memref<24x64xf32, #tpu.memory_space<vmem>>, %arg1: memref<64x32xf32, #tpu.memory_space<vmem>>, %arg2: memref<1x32xf32, #tpu.memory_space<vmem>>, %arg3: memref<24x32xf32, #tpu.memory_space<vmem>>) attributes {dimension_semantics = [], scalar_prefetch = 0 : i64, scratch_operands = 0 : i64, tpu.core_type = #tpu.core_type<tc>} {
    %c0 = arith.constant 0 : index
    %c0_0 = arith.constant 0 : index
    %0 = vector.load %arg0[%c0, %c0_0] : memref<24x64xf32, #tpu.memory_space<vmem>>, vector<24x64xf32>
    %c0_1 = arith.constant 0 : index
    %c0_2 = arith.constant 0 : index
    %1 = vector.load %arg1[%c0_1, %c0_2] : memref<64x32xf32, #tpu.memory_space<vmem>>, vector<64x32xf32>
    %cst = arith.constant dense<0.000000e+00> : vector<24x32xf32>
    %2 = tpu.matmul %0, %1, %cst {dimension_numbers = #tpu.dot_dimension_numbers<[1], [0], [0], [1], [0, 0, 1, 1], [], []>} : vector<24x64xf32>, vector<64x32xf32>, vector<24x32xf32> -> vector<24x32xf32>
    %c0_3 = arith.constant 0 : index
    %c0_4 = arith.constant 0 : index
    %3 = vector.load %arg2[%c0_3, %c0_4] : memref<1x32xf32, #tpu.memory_space<vmem>>, vector<1x32xf32>
    %4 = vector.broadcast %3 : vector<1x32xf32> to vector<24x32xf32>
    %5 = arith.addf %2, %4 : vector<24x32xf32>
    %c0_5 = arith.constant 0 : index
    %c0_6 = arith.constant 0 : index
    %6 = vector.load %arg3[%c0_5, %c0_6] : memref<24x32xf32, #tpu.memory_space<vmem>>, vector<24x32xf32>
    tpu.vector_store %arg3[%c0_5, %c0_6], %5 {strides = array<i32>} : memref<24x32xf32, #tpu.memory_space<vmem>>, vector<24x32xf32>,
    return
  }
}

module attributes {stable_mosaic.version = 11 : i64} {
  func.func @decoder_kernel(%arg0: i32, %arg1: memref<5xi32, #tpu.memory_space<smem>>, %arg2: memref<1x4x1xi32, #tpu.memory_space<vmem>>, %arg3: memref<4x32xf32, #tpu.memory_space<vmem>>, %arg4: memref<4x6x64xf32, #tpu.memory_space<vmem>>, %arg5: memref<4x6x32xf32, #tpu.memory_space<vmem>>, %arg6: memref<10x16xf32, #tpu.memory_space<vmem>>, %arg7: memref<32x32xf32, #tpu.memory_space<vmem>>, %arg8: memref<1x32xf32, #tpu.memory_space<vmem>>, %arg9: memref<16x96xf32, #tpu.memory_space<vmem>>, %arg10: memref<64x96xf32, #tpu.memory_space<vmem>>, %arg11: memref<1x96xf32, #tpu.memory_space<vmem>>, %arg12: memref<32x96xf32, #tpu.memory_space<vmem>>, %arg13: memref<1x96xf32, #tpu.memory_space<vmem>>, %arg14: memref<32x10xf32, #tpu.memory_space<vmem>>, %arg15: memref<64x10xf32, #tpu.memory_space<vmem>>, %arg16: memref<16x10xf32, #tpu.memory_space<vmem>>, %arg17: memref<1x10xf32, #tpu.memory_space<vmem>>, %arg18: memref<1x4x10xf32, #tpu.memory_space<vmem>>, %arg19: memref<4x1xi32, #tpu.memory_space<vmem>>, %arg20: memref<4x32xf32, #tpu.memory_space<vmem>>) attributes {dimension_semantics = [#tpu.dimension_semantics<arbitrary>], iteration_bounds = array<i64: 5>, scalar_prefetch = 1 : i64, scratch_operands = 2 : i64, tpu.core_type = #tpu.core_type<tc>, window_params = [{transform_indices = @transform_0, window_bounds = array<i64: 1, 4, 1>}, {pipeline_mode = #tpu.pipeline_mode<synchronous>, transform_indices = @transform_1, window_bounds = array<i64: 4, 32>}, {pipeline_mode = #tpu.pipeline_mode<synchronous>, transform_indices = @transform_2, window_bounds = array<i64: 4, 6, 64>}, {pipeline_mode = #tpu.pipeline_mode<synchronous>, transform_indices = @transform_3, window_bounds = array<i64: 4, 6, 32>}, {pipeline_mode = #tpu.pipeline_mode<synchronous>, transform_indices = @transform_4, window_bounds = array<i64: 10, 16>}, {pipeline_mode = #tpu.pipeline_mode<synchronous>, transform_indices = @transform_5, window_bounds = array<i64: 32, 32>}, {pipeline_mode = #tpu.pipeline_mode<synchronous>, transform_indices = @transform_6, window_bounds = array<i64: 1, 32>}, {pipeline_mode = #tpu.pipeline_mode<synchronous>, transform_indices = @transform_7, window_bounds = array<i64: 16, 96>}, {pipeline_mode = #tpu.pipeline_mode<synchronous>, transform_indices = @transform_8, window_bounds = array<i64: 64, 96>}, {pipeline_mode = #tpu.pipeline_mode<synchronous>, transform_indices = @transform_9, window_bounds = array<i64: 1, 96>}, {pipeline_mode = #tpu.pipeline_mode<synchronous>, transform_indices = @transform_10, window_bounds = array<i64: 32, 96>}, {pipeline_mode = #tpu.pipeline_mode<synchronous>, transform_indices = @transform_11, window_bounds = array<i64: 1, 96>}, {pipeline_mode = #tpu.pipeline_mode<synchronous>, transform_indices = @transform_12, window_bounds = array<i64: 32, 10>}, {pipeline_mode = #tpu.pipeline_mode<synchronous>, transform_indices = @transform_13, window_bounds = array<i64: 64, 10>}, {pipeline_mode = #tpu.pipeline_mode<synchronous>, transform_indices = @transform_14, window_bounds = array<i64: 16, 10>}, {pipeline_mode = #tpu.pipeline_mode<synchronous>, transform_indices = @transform_15, window_bounds = array<i64: 1, 10>}, {transform_indices = @transform_16, window_bounds = array<i64: 1, 4, 10>}]} {
    %c0_i32 = arith.constant 0 : i32
    %0 = arith.cmpi eq, %arg0, %c0_i32 : i32
    %1 = arith.extui %0 : i1 to i32
    %c0_i32_0 = arith.constant 0 : i32
    %2 = arith.cmpi ne, %1, %c0_i32_0 : i32
    scf.if %2 {
      %c0_61 = arith.constant 0 : index
      %c0_62 = arith.constant 0 : index
      %c0_63 = arith.constant 0 : index
      %113 = vector.load %arg2[%c0_61, %c0_62, %c0_63] : memref<1x4x1xi32, #tpu.memory_space<vmem>>, vector<1x4x1xi32>
      %114 = vector.shape_cast %113 : vector<1x4x1xi32> to vector<4x1xi32>
      %c0_64 = arith.constant 0 : index
      %c0_65 = arith.constant 0 : index
      %115 = vector.load %arg19[%c0_64, %c0_65] : memref<4x1xi32, #tpu.memory_space<vmem>>, vector<4x1xi32>
      tpu.vector_store %arg19[%c0_64, %c0_65], %114 {strides = array<i32>} : memref<4x1xi32, #tpu.memory_space<vmem>>, vector<4x1xi32>,
      %c0_66 = arith.constant 0 : index
      %c0_67 = arith.constant 0 : index
      %116 = vector.load %arg3[%c0_66, %c0_67] : memref<4x32xf32, #tpu.memory_space<vmem>>, vector<4x32xf32>
      %c0_68 = arith.constant 0 : index
      %c0_69 = arith.constant 0 : index
      %117 = vector.load %arg20[%c0_68, %c0_69] : memref<4x32xf32, #tpu.memory_space<vmem>>, vector<4x32xf32>
      tpu.vector_store %arg20[%c0_68, %c0_69], %116 {strides = array<i32>} : memref<4x32xf32, #tpu.memory_space<vmem>>, vector<4x32xf32>,
    } else {
    }
    %c0 = arith.constant 0 : index
    %c0_1 = arith.constant 0 : index
    %3 = vector.load %arg19[%c0, %c0_1] : memref<4x1xi32, #tpu.memory_space<vmem>>, vector<4x1xi32>
    %c0_2 = arith.constant 0 : index
    %c0_3 = arith.constant 0 : index
    %4 = vector.load %arg20[%c0_2, %c0_3] : memref<4x32xf32, #tpu.memory_space<vmem>>, vector<4x32xf32>
    %5 = tpu.iota {dimensions = array<i32: 1>} : vector<4x10xi32>
    %6 = vector.broadcast %3 : vector<4x1xi32> to vector<4x10xi32>
    %7 = arith.cmpi eq, %5, %6 : vector<4x10xi32>
    %8 = arith.extui %7 : vector<4x10xi1> to vector<4x10xi32>
    %9 = arith.sitofp %8 : vector<4x10xi32> to vector<4x10xf32>
    %c0_4 = arith.constant 0 : index
    %c0_5 = arith.constant 0 : index
    %10 = vector.load %arg6[%c0_4, %c0_5] : memref<10x16xf32, #tpu.memory_space<vmem>>, vector<10x16xf32>
    %cst = arith.constant dense<0.000000e+00> : vector<4x16xf32>
    %11 = tpu.matmul %9, %10, %cst {dimension_numbers = #tpu.dot_dimension_numbers<[1], [0], [0], [1], [0, 0, 1, 1], [], []>} : vector<4x10xf32>, vector<10x16xf32>, vector<4x16xf32> -> vector<4x16xf32>
    %c0_6 = arith.constant 0 : index
    %c0_7 = arith.constant 0 : index
    %12 = vector.load %arg7[%c0_6, %c0_7] : memref<32x32xf32, #tpu.memory_space<vmem>>, vector<32x32xf32>
    %cst_8 = arith.constant dense<0.000000e+00> : vector<4x32xf32>
    %13 = tpu.matmul %4, %12, %cst_8 {dimension_numbers = #tpu.dot_dimension_numbers<[1], [0], [0], [1], [0, 0, 1, 1], [], []>} : vector<4x32xf32>, vector<32x32xf32>, vector<4x32xf32> -> vector<4x32xf32>
    %c0_9 = arith.constant 0 : index
    %c0_10 = arith.constant 0 : index
    %c0_11 = arith.constant 0 : index
    %14 = vector.load %arg5[%c0_9, %c0_10, %c0_11] : memref<4x6x32xf32, #tpu.memory_space<vmem>>, vector<4x6x32xf32>
    %15 = vector.shape_cast %13 : vector<4x32xf32> to vector<4x1x32xf32>
    %16 = vector.broadcast %15 : vector<4x1x32xf32> to vector<4x6x32xf32>
    %17 = arith.addf %14, %16 : vector<4x6x32xf32>
    %18 = math.tanh %17 : vector<4x6x32xf32>
    %c0_12 = arith.constant 0 : index
    %c0_13 = arith.constant 0 : index
    %19 = vector.load %arg8[%c0_12, %c0_13] : memref<1x32xf32, #tpu.memory_space<vmem>>, vector<1x32xf32>
    %20 = vector.shape_cast %19 : vector<1x32xf32> to vector<1x1x32xf32>
    %21 = vector.broadcast %20 : vector<1x1x32xf32> to vector<4x6x32xf32>
    %22 = arith.mulf %18, %21 : vector<4x6x32xf32>
    %cst_14 = arith.constant dense<0.000000e+00> : vector<4x6xf32>
    %23 = vector.multi_reduction <add>, %22, %cst_14 [2] : vector<4x6x32xf32> to vector<4x6xf32>
    %cst_15 = arith.constant dense<0xFF800000> : vector<4xf32>
    %24 = vector.multi_reduction <maximumf>, %23, %cst_15 [1] : vector<4x6xf32> to vector<4xf32>
    %25 = vector.shape_cast %24 : vector<4xf32> to vector<4x1xf32>
    %26 = vector.broadcast %25 : vector<4x1xf32> to vector<4x6xf32>
    %27 = arith.subf %23, %26 : vector<4x6xf32>
    %28 = math.exp %27 : vector<4x6xf32>
    %cst_16 = arith.constant dense<0.000000e+00> : vector<4xf32>
    %29 = vector.multi_reduction <add>, %28, %cst_16 [1] : vector<4x6xf32> to vector<4xf32>
    %30 = vector.shape_cast %29 : vector<4xf32> to vector<4x1xf32>
    %31 = vector.broadcast %30 : vector<4x1xf32> to vector<4x6xf32>
    %32 = arith.divf %28, %31 : vector<4x6xf32>
    %33 = vector.shape_cast %32 : vector<4x6xf32> to vector<4x1x6xf32>
    %c0_17 = arith.constant 0 : index
    %c0_18 = arith.constant 0 : index
    %c0_19 = arith.constant 0 : index
    %34 = vector.load %arg4[%c0_17, %c0_18, %c0_19] : memref<4x6x64xf32, #tpu.memory_space<vmem>>, vector<4x6x64xf32>
    "tpu.trace_start"() <{level = 10 : i32, message = "bqs,bse->bqe"}> : () -> ()
    %cst_20 = arith.constant dense<0.000000e+00> : vector<4x1x64xf32>
    %35 = tpu.matmul %33, %34, %cst_20 {dimension_numbers = #tpu.dot_dimension_numbers<[2], [1], [1], [2], [0, 0, 0, 1, 1, 2], [0], [0]>} : vector<4x1x6xf32>, vector<4x6x64xf32>, vector<4x1x64xf32> -> vector<4x1x64xf32>
    "tpu.trace_stop"() : () -> ()
    %36 = vector.shape_cast %35 : vector<4x1x64xf32> to vector<4x64xf32>
    %c0_21 = arith.constant 0 : index
    %c0_22 = arith.constant 0 : index
    %37 = vector.load %arg9[%c0_21, %c0_22] : memref<16x96xf32, #tpu.memory_space<vmem>>, vector<16x96xf32>
    %cst_23 = arith.constant dense<0.000000e+00> : vector<4x96xf32>
    %38 = tpu.matmul %11, %37, %cst_23 {dimension_numbers = #tpu.dot_dimension_numbers<[1], [0], [0], [1], [0, 0, 1, 1], [], []>} : vector<4x16xf32>, vector<16x96xf32>, vector<4x96xf32> -> vector<4x96xf32>
    %c0_24 = arith.constant 0 : index
    %c0_25 = arith.constant 0 : index
    %39 = vector.load %arg10[%c0_24, %c0_25] : memref<64x96xf32, #tpu.memory_space<vmem>>, vector<64x96xf32>
    %cst_26 = arith.constant dense<0.000000e+00> : vector<4x96xf32>
    %40 = tpu.matmul %36, %39, %cst_26 {dimension_numbers = #tpu.dot_dimension_numbers<[1], [0], [0], [1], [0, 0, 1, 1], [], []>} : vector<4x64xf32>, vector<64x96xf32>, vector<4x96xf32> -> vector<4x96xf32>
    %41 = arith.addf %38, %40 : vector<4x96xf32>
    %c0_27 = arith.constant 0 : index
    %c0_28 = arith.constant 0 : index
    %42 = vector.load %arg11[%c0_27, %c0_28] : memref<1x96xf32, #tpu.memory_space<vmem>>, vector<1x96xf32>
    %43 = vector.broadcast %42 : vector<1x96xf32> to vector<4x96xf32>
    %44 = arith.addf %41, %43 : vector<4x96xf32>
    %c0_29 = arith.constant 0 : index
    %c0_30 = arith.constant 0 : index
    %45 = vector.load %arg12[%c0_29, %c0_30] : memref<32x96xf32, #tpu.memory_space<vmem>>, vector<32x96xf32>
    %cst_31 = arith.constant dense<0.000000e+00> : vector<4x96xf32>
    %46 = tpu.matmul %4, %45, %cst_31 {dimension_numbers = #tpu.dot_dimension_numbers<[1], [0], [0], [1], [0, 0, 1, 1], [], []>} : vector<4x32xf32>, vector<32x96xf32>, vector<4x96xf32> -> vector<4x96xf32>
    %c0_32 = arith.constant 0 : index
    %c0_33 = arith.constant 0 : index
    %47 = vector.load %arg13[%c0_32, %c0_33] : memref<1x96xf32, #tpu.memory_space<vmem>>, vector<1x96xf32>
    %48 = vector.broadcast %47 : vector<1x96xf32> to vector<4x96xf32>
    %49 = arith.addf %46, %48 : vector<4x96xf32>
    %50 = vector.extract_strided_slice %44 {offsets = [0, 0], sizes = [4, 32], strides = [1, 1]} : vector<4x96xf32> to vector<4x32xf32>
    %51 = vector.extract_strided_slice %49 {offsets = [0, 0], sizes = [4, 32], strides = [1, 1]} : vector<4x96xf32> to vector<4x32xf32>
    %52 = arith.addf %50, %51 : vector<4x32xf32>
    %53 = arith.negf %52 : vector<4x32xf32>
    %54 = math.exp %53 : vector<4x32xf32>
    %cst_34 = arith.constant 1.000000e+00 : f32
    %55 = vector.broadcast %cst_34 : f32 to vector<4x32xf32>
    %56 = arith.addf %55, %54 : vector<4x32xf32>
    %57 = arith.divf %55, %56 : vector<4x32xf32>
    %58 = vector.extract_strided_slice %44 {offsets = [0, 32], sizes = [4, 32], strides = [1, 1]} : vector<4x96xf32> to vector<4x32xf32>
    %59 = vector.extract_strided_slice %49 {offsets = [0, 32], sizes = [4, 32], strides = [1, 1]} : vector<4x96xf32> to vector<4x32xf32>
    %60 = arith.addf %58, %59 : vector<4x32xf32>
    %61 = arith.negf %60 : vector<4x32xf32>
    %62 = math.exp %61 : vector<4x32xf32>
    %cst_35 = arith.constant 1.000000e+00 : f32
    %63 = vector.broadcast %cst_35 : f32 to vector<4x32xf32>
    %64 = arith.addf %63, %62 : vector<4x32xf32>
    %65 = arith.divf %63, %64 : vector<4x32xf32>
    %66 = vector.extract_strided_slice %44 {offsets = [0, 64], sizes = [4, 32], strides = [1, 1]} : vector<4x96xf32> to vector<4x32xf32>
    %67 = vector.extract_strided_slice %49 {offsets = [0, 64], sizes = [4, 32], strides = [1, 1]} : vector<4x96xf32> to vector<4x32xf32>
    %68 = arith.mulf %57, %67 : vector<4x32xf32>
    %69 = arith.addf %66, %68 : vector<4x32xf32>
    %70 = math.tanh %69 : vector<4x32xf32>
    %cst_36 = arith.constant 1.000000e+00 : f32
    %71 = vector.broadcast %cst_36 : f32 to vector<4x32xf32>
    %72 = arith.subf %71, %65 : vector<4x32xf32>
    %73 = arith.mulf %72, %70 : vector<4x32xf32>
    %74 = arith.mulf %65, %4 : vector<4x32xf32>
    %75 = arith.addf %73, %74 : vector<4x32xf32>
    %c0_37 = arith.constant 0 : index
    %c0_38 = arith.constant 0 : index
    %76 = vector.load %arg14[%c0_37, %c0_38] : memref<32x10xf32, #tpu.memory_space<vmem>>, vector<32x10xf32>
    %cst_39 = arith.constant dense<0.000000e+00> : vector<4x10xf32>
    %77 = tpu.matmul %75, %76, %cst_39 {dimension_numbers = #tpu.dot_dimension_numbers<[1], [0], [0], [1], [0, 0, 1, 1], [], []>} : vector<4x32xf32>, vector<32x10xf32>, vector<4x10xf32> -> vector<4x10xf32>
    %c0_40 = arith.constant 0 : index
    %c0_41 = arith.constant 0 : index
    %78 = vector.load %arg15[%c0_40, %c0_41] : memref<64x10xf32, #tpu.memory_space<vmem>>, vector<64x10xf32>
    %cst_42 = arith.constant dense<0.000000e+00> : vector<4x10xf32>
    %79 = tpu.matmul %36, %78, %cst_42 {dimension_numbers = #tpu.dot_dimension_numbers<[1], [0], [0], [1], [0, 0, 1, 1], [], []>} : vector<4x64xf32>, vector<64x10xf32>, vector<4x10xf32> -> vector<4x10xf32>
    %80 = arith.addf %77, %79 : vector<4x10xf32>
    %c0_43 = arith.constant 0 : index
    %c0_44 = arith.constant 0 : index
    %81 = vector.load %arg16[%c0_43, %c0_44] : memref<16x10xf32, #tpu.memory_space<vmem>>, vector<16x10xf32>
    %cst_45 = arith.constant dense<0.000000e+00> : vector<4x10xf32>
    %82 = tpu.matmul %11, %81, %cst_45 {dimension_numbers = #tpu.dot_dimension_numbers<[1], [0], [0], [1], [0, 0, 1, 1], [], []>} : vector<4x16xf32>, vector<16x10xf32>, vector<4x10xf32> -> vector<4x10xf32>
    %83 = arith.addf %80, %82 : vector<4x10xf32>
    %c0_46 = arith.constant 0 : index
    %c0_47 = arith.constant 0 : index
    %84 = vector.load %arg17[%c0_46, %c0_47] : memref<1x10xf32, #tpu.memory_space<vmem>>, vector<1x10xf32>
    %85 = vector.broadcast %84 : vector<1x10xf32> to vector<4x10xf32>
    %86 = arith.addf %83, %85 : vector<4x10xf32>
    %c0_48 = arith.constant 0 : index
    %c0_49 = arith.constant 0 : index
    %c0_50 = arith.constant 0 : index
    %87 = vector.load %arg18[%c0_48, %c0_49, %c0_50] : memref<1x4x10xf32, #tpu.memory_space<vmem>>, vector<1x4x10xf32>
    %88 = vector.shape_cast %87 : vector<1x4x10xf32> to vector<4x10xf32>
    %89 = vector.shape_cast %86 : vector<4x10xf32> to vector<1x4x10xf32>
    tpu.vector_store %arg18[%c0_48, %c0_49, %c0_50], %89 {strides = array<i32>} : memref<1x4x10xf32, #tpu.memory_space<vmem>>, vector<1x4x10xf32>,
    %cst_51 = arith.constant dense<0xFF800000> : vector<4xf32>
    %90 = vector.multi_reduction <maximumf>, %86, %cst_51 [1] : vector<4x10xf32> to vector<4xf32>
    %91 = vector.shape_cast %90 : vector<4xf32> to vector<4x1xf32>
    %92 = tpu.iota {dimensions = array<i32: 1>} : vector<4x10xi32>
    %93 = arith.sitofp %92 : vector<4x10xi32> to vector<4x10xf32>
    %94 = vector.broadcast %91 : vector<4x1xf32> to vector<4x10xf32>
    %95 = arith.cmpf oeq, %86, %94 : vector<4x10xf32>
    %cst_52 = arith.constant 1.000000e+01 : f32
    %96 = vector.broadcast %cst_52 : f32 to vector<4x10xf32>
    %97 = arith.select %95, %93, %96 : vector<4x10xi1>, vector<4x10xf32>
    %cst_53 = arith.constant dense<0x7F800000> : vector<4xf32>
    %98 = vector.multi_reduction <minimumf>, %97, %cst_53 [1] : vector<4x10xf32> to vector<4xf32>
    %99 = vector.shape_cast %98 : vector<4xf32> to vector<4x1xf32>
    %100 = arith.fptosi %99 : vector<4x1xf32> to vector<4x1xi32>
    %101 = arith.index_cast %arg0 : i32 to index
    %102 = memref.load %arg1[%101] : memref<5xi32, #tpu.memory_space<smem>>
    %c0_54 = arith.constant 0 : index
    %c0_55 = arith.constant 0 : index
    %c0_56 = arith.constant 0 : index
    %103 = vector.load %arg2[%c0_54, %c0_55, %c0_56] : memref<1x4x1xi32, #tpu.memory_space<vmem>>, vector<1x4x1xi32>
    %104 = vector.shape_cast %103 : vector<1x4x1xi32> to vector<4x1xi32>
    %105 = vector.broadcast %102 : i32 to vector<4x1xi32>
    %106 = arith.muli %105, %104 : vector<4x1xi32>
    %c1_i32 = arith.constant 1 : i32
    %107 = arith.subi %c1_i32, %102 : i32
    %108 = vector.broadcast %107 : i32 to vector<4x1xi32>
    %109 = arith.muli %108, %100 : vector<4x1xi32>
    %110 = arith.addi %106, %109 : vector<4x1xi32>
    %c0_57 = arith.constant 0 : index
    %c0_58 = arith.constant 0 : index
    %111 = vector.load %arg19[%c0_57, %c0_58] : memref<4x1xi32, #tpu.memory_space<vmem>>, vector<4x1xi32>
    tpu.vector_store %arg19[%c0_57, %c0_58], %110 {strides = array<i32>} : memref<4x1xi32, #tpu.memory_space<vmem>>, vector<4x1xi32>,
    %c0_59 = arith.constant 0 : index
    %c0_60 = arith.constant 0 : index
    %112 = vector.load %arg20[%c0_59, %c0_60] : memref<4x32xf32, #tpu.memory_space<vmem>>, vector<4x32xf32>
    tpu.vector_store %arg20[%c0_59, %c0_60], %75 {strides = array<i32>} : memref<4x32xf32, #tpu.memory_space<vmem>>, vector<4x32xf32>,
    return
  }
  func.func @transform_0(%arg0: i32, %arg1: memref<5xi32, #tpu.memory_space<smem>>) -> (i32, i32, i32) {
    %c0_i32 = arith.constant 0 : i32
    %c0_i32_0 = arith.constant 0 : i32
    %c0_i32_1 = arith.constant 0 : i32
    return %arg0, %c0_i32, %c0_i32_0 : i32, i32, i32
  }
  func.func @transform_1(%arg0: i32, %arg1: memref<5xi32, #tpu.memory_space<smem>>) -> (i32, i32) {
    %c0_i32 = arith.constant 0 : i32
    %c0_i32_0 = arith.constant 0 : i32
    %c0_i32_1 = arith.constant 0 : i32
    return %c0_i32, %c0_i32_0 : i32, i32
  }
  func.func @transform_2(%arg0: i32, %arg1: memref<5xi32, #tpu.memory_space<smem>>) -> (i32, i32, i32) {
    %c0_i32 = arith.constant 0 : i32
    %c0_i32_0 = arith.constant 0 : i32
    %c0_i32_1 = arith.constant 0 : i32
    %c0_i32_2 = arith.constant 0 : i32
    return %c0_i32, %c0_i32_0, %c0_i32_1 : i32, i32, i32
  }
  func.func @transform_3(%arg0: i32, %arg1: memref<5xi32, #tpu.memory_space<smem>>) -> (i32, i32, i32) {
    %c0_i32 = arith.constant 0 : i32
    %c0_i32_0 = arith.constant 0 : i32
    %c0_i32_1 = arith.constant 0 : i32
    %c0_i32_2 = arith.constant 0 : i32
    return %c0_i32, %c0_i32_0, %c0_i32_1 : i32, i32, i32
  }
  func.func @transform_4(%arg0: i32, %arg1: memref<5xi32, #tpu.memory_space<smem>>) -> (i32, i32) {
    %c0_i32 = arith.constant 0 : i32
    %c0_i32_0 = arith.constant 0 : i32
    %c0_i32_1 = arith.constant 0 : i32
    return %c0_i32, %c0_i32_0 : i32, i32
  }
  func.func @transform_5(%arg0: i32, %arg1: memref<5xi32, #tpu.memory_space<smem>>) -> (i32, i32) {
    %c0_i32 = arith.constant 0 : i32
    %c0_i32_0 = arith.constant 0 : i32
    %c0_i32_1 = arith.constant 0 : i32
    return %c0_i32, %c0_i32_0 : i32, i32
  }
  func.func @transform_6(%arg0: i32, %arg1: memref<5xi32, #tpu.memory_space<smem>>) -> (i32, i32) {
    %c0_i32 = arith.constant 0 : i32
    %c0_i32_0 = arith.constant 0 : i32
    %c0_i32_1 = arith.constant 0 : i32
    return %c0_i32, %c0_i32_0 : i32, i32
  }
  func.func @transform_7(%arg0: i32, %arg1: memref<5xi32, #tpu.memory_space<smem>>) -> (i32, i32) {
    %c0_i32 = arith.constant 0 : i32
    %c0_i32_0 = arith.constant 0 : i32
    %c0_i32_1 = arith.constant 0 : i32
    return %c0_i32, %c0_i32_0 : i32, i32
  }
  func.func @transform_8(%arg0: i32, %arg1: memref<5xi32, #tpu.memory_space<smem>>) -> (i32, i32) {
    %c0_i32 = arith.constant 0 : i32
    %c0_i32_0 = arith.constant 0 : i32
    %c0_i32_1 = arith.constant 0 : i32
    return %c0_i32, %c0_i32_0 : i32, i32
  }
  func.func @transform_9(%arg0: i32, %arg1: memref<5xi32, #tpu.memory_space<smem>>) -> (i32, i32) {
    %c0_i32 = arith.constant 0 : i32
    %c0_i32_0 = arith.constant 0 : i32
    %c0_i32_1 = arith.constant 0 : i32
    return %c0_i32, %c0_i32_0 : i32, i32
  }
  func.func @transform_10(%arg0: i32, %arg1: memref<5xi32, #tpu.memory_space<smem>>) -> (i32, i32) {
    %c0_i32 = arith.constant 0 : i32
    %c0_i32_0 = arith.constant 0 : i32
    %c0_i32_1 = arith.constant 0 : i32
    return %c0_i32, %c0_i32_0 : i32, i32
  }
  func.func @transform_11(%arg0: i32, %arg1: memref<5xi32, #tpu.memory_space<smem>>) -> (i32, i32) {
    %c0_i32 = arith.constant 0 : i32
    %c0_i32_0 = arith.constant 0 : i32
    %c0_i32_1 = arith.constant 0 : i32
    return %c0_i32, %c0_i32_0 : i32, i32
  }
  func.func @transform_12(%arg0: i32, %arg1: memref<5xi32, #tpu.memory_space<smem>>) -> (i32, i32) {
    %c0_i32 = arith.constant 0 : i32
    %c0_i32_0 = arith.constant 0 : i32
    %c0_i32_1 = arith.constant 0 : i32
    return %c0_i32, %c0_i32_0 : i32, i32
  }
  func.func @transform_13(%arg0: i32, %arg1: memref<5xi32, #tpu.memory_space<smem>>) -> (i32, i32) {
    %c0_i32 = arith.constant 0 : i32
    %c0_i32_0 = arith.constant 0 : i32
    %c0_i32_1 = arith.constant 0 : i32
    return %c0_i32, %c0_i32_0 : i32, i32
  }
  func.func @transform_14(%arg0: i32, %arg1: memref<5xi32, #tpu.memory_space<smem>>) -> (i32, i32) {
    %c0_i32 = arith.constant 0 : i32
    %c0_i32_0 = arith.constant 0 : i32
    %c0_i32_1 = arith.constant 0 : i32
    return %c0_i32, %c0_i32_0 : i32, i32
  }
  func.func @transform_15(%arg0: i32, %arg1: memref<5xi32, #tpu.memory_space<smem>>) -> (i32, i32) {
    %c0_i32 = arith.constant 0 : i32
    %c0_i32_0 = arith.constant 0 : i32
    %c0_i32_1 = arith.constant 0 : i32
    return %c0_i32, %c0_i32_0 : i32, i32
  }
  func.func @transform_16(%arg0: i32, %arg1: memref<5xi32, #tpu.memory_space<smem>>) -> (i32, i32, i32) {
    %c0_i32 = arith.constant 0 : i32
    %c0_i32_0 = arith.constant 0 : i32
    %c0_i32_1 = arith.constant 0 : i32
    return %arg0, %c0_i32, %c0_i32_0 : i32, i32, i32
  }
}

</mosaic_0001>

<bundles_post_ra>
// kernel: seq2seq_forward.9
= control target key start
LH: loop header
LB: loop body
LE: loop exit
PB: predicated region body
PF: predicated region fallthrough
CT: control target
= control target key end

     0   :  { %v158_v0 = vmov 0.0|0.0   ;;  %vm159_vm0 = vmmov 0   ;;  %v160_v4 = vmov 0.0   ;;  %vm30_vm1 = vcmask 523264   ;;  %s214_s1 = inlined_call_operand.vmem [shape: f32[64,32], index: 1, kind: input, shape index: {}]   ;;  %s215_s0 = inlined_call_operand.vmem [shape: f32[4,64], index: 0, kind: input, shape index: {}]   ;;  %s216_s2 = inlined_call_operand.vmem [shape: f32[1,32], index: 2, kind: input, shape index: {}]   ;;  %s217_s3 = inlined_call_operand.vmem [shape: f32[4,32], index: 3, kind: output, shape index: {}]  }
   0x1   :  { %141 = vmatprep.subr.bf16.mxu0 %v158_v0  ;;  %v15_v1 = vld [vmem:[%s214_s1] sm:$0xff]  ;;  %v16_v2 = vld [vmem:[%s214_s1 + $0x8] sm:$0xff]  ;;  %v17_v3 = vld [vmem:[%s214_s1 + $0x10] sm:$0xff]  ;;  %138 = vmatprep.mubr.msk.f32.mxu0 %vm159_vm0, %v160_v4  ;;  %vm105_vm2 = vcmask 257024  }
   0x2   :  { %v142_v5 = vpack.c.bf16 %v16_v2, %v15_v1  ;;  %v18_v6 = vld [vmem:[%s214_s1 + $0x18] sm:$0xff]  ;;  %v19_v8 = vld [vmem:[%s214_s1 + $0x20] sm:$0xff]  ;;  %v20_v9 = vld [vmem:[%s214_s1 + $0x28] sm:$0xff] }
   0x3   :  { %v145_v7 = vpack.c.bf16 %v18_v6, %v17_v3  ;;  %v148_v10 = vpack.c.bf16 %v20_v9, %v19_v8  ;;  %v21_v11 = vld [vmem:[%s214_s1 + $0x30] sm:$0xff]  ;;  %v22_v12 = vld [vmem:[%s214_s1 + $0x38] sm:$0xff]  ;;  %v14_v14 = vld [vmem:[%s215_s0] sm:$0xf] }
   0x4   :  { %143 = vmatpush3.bf16.msra.mxu0 %v142_v5  ;;  %v151_v13 = vpack.c.bf16 %v22_v12, %v21_v11  ;;  %v111_v15 = vld [vmem:[%s216_s2] ss:$0 sm:$0xff] }
   0x5   :  { %144 = vmatprep.subr.bf16.mxu0 %v158_v0 }
   0x8   :  { %146 = vmatpush3.bf16.msra.mxu0 %v145_v7 }
   0x9   :  { %147 = vmatprep.subr.bf16.mxu0 %v158_v0 }
   0xc   :  { %149 = vmatpush3.bf16.msra.mxu0 %v148_v10 }
   0xd   :  { %150 = vmatprep.subr.bf16.mxu0 %v158_v0 }
  0x10   :  { %152 = vmatpush3.bf16.msra.mxu0 %v151_v13 }
  0x13   :  { %139 = vmatmul.mubr.msk.f32.vlgmr.msra.gmra.mrb[0].mxu0 %vm30_vm1, %v14_v14 }
  0xe6   :  { %v100_v16 = vpop.f32.mrb[0].mxu0 }
  0xe7   :  { %v101_v17 = vadd.f32 %v111_v15, %v100_v16  ;;  %v140_v18 = vpop.f32.mrb[1].mxu0 }
  0xe9   :  { %156 = vtanh.f32 %v101_v17 }
  0xf3   :  { %v157_v19 = vpop.eup %156 }
  0xf4   :  { %106 = vst.msk [vmem:[%s217_s3] sm:$0xf] %vm105_vm2, %v157_v19 }

// kernel: seq2seq_forward.7
= control target key start
LH: loop header
LB: loop body
LE: loop exit
PB: predicated region body
PF: predicated region fallthrough
CT: control target
= control target key end

     0   :  { %s439_s12 = smov 0   ;;  %s477_s0 = inlined_call_operand.vmem [shape: f32[6,4,96], index: 0, kind: input, shape index: {}]   ;;  %s478_s1 = inlined_call_operand.vmem [shape: f32[32,96], index: 1, kind: input, shape index: {}]   ;;  %s479_s2 = inlined_call_operand.vmem [shape: f32[1,96], index: 2, kind: input, shape index: {}]   ;;  %s480_s3 = inlined_call_operand.vmem [shape: f32[6,4,32], index: 3, kind: output, shape index: {}]  }
   0x1 LB: > { %s348_s13 = sadd.s32 4294967295, %s410_s12   ;;  %p352_p0 = scmp.ge.s32.totalorder %s410_s12, 1  ;;  %s410_s12 = sphi %s439_s12, %s13_s12  }
   0x2   : > { %p136_p1 = scmp.lt.s32.totalorder %s410_s12, 7 }
   0x4   : > { %p137_p2 = pnand %p352_p0, %p136_p1 }
   0x5   : > { %p158_p3 = scmp.lt.s32.totalorder (!%p137_p2), %s348_s13, 5  ;;  %p355_p4 = scmp.ne.s32.totalorder (!%p137_p2), %s348_s13, 0 }
   0x6   : > { %140 = sbr.rel (%p137_p2) target bundleno = 729 (0x2d9), region = 32 }
   0xd   : > { %s159_s14 = scalar_select %p158_p3, %s348_s13, 5 }
   0xe   : > { %169 = sbr.rel (%p355_p4) target bundleno = 21 (0x15), region = 36  ;;  %vm170_vm0 = vcmask (!%p355_p4), 257024   ;;  %v412_v0 = vmov (!%p355_p4), 0.0  }
   0xf   : > { %s353_s15 = sshll.u32 %s159_s14, 2  ;;  %171 = vst.msk [vmem:[#allocation2] sm:$0xf] (!%p355_p4), %vm170_vm0, %v412_v0 }
  0x10   : > { %s450_s18 = scalar_lea.vmem %s477_s0, %s353_s15  ;;  %s455_s21 = scalar_lea.vmem %s480_s3, %s353_s15 }
  0x15 PF: > { %v174_v1 = vld [vmem:[%s478_s1] sm:$0xff]  ;;  %v175_v2 = vld [vmem:[%s478_s1 + $0x8] sm:$0xff]  ;;  %v176_v3 = vld [vmem:[%s478_s1 + $0x10] sm:$0xff]  ;;  %v413_v4 = vmov 0.0|0.0   ;;  %vm414_vm1 = vmmov 0   ;;  %v415_v7 = vmov 0.0  }
  0x16   : > { %377 = vmatprep.subr.bf16.mxu0 %v413_v4  ;;  %v378_v5 = vpack.c.bf16 %v175_v2, %v174_v1  ;;  %v177_v6 = vld [vmem:[%s478_s1 + $0x18] sm:$0xff]  ;;  %374 = vmatprep.mubr.msk.f32.mxu0 %vm414_vm1, %v415_v7  ;;  %v172_v9 = vld [vmem:[#allocation2] sm:$0xf]  ;;  %vm185_vm2 = vcmask 261120   ;;  %s416_s5 = smov 64   ;;  %s417_s6 = smov 96  }
  0x17   : > { %v381_v8 = vpack.c.bf16 %v177_v6, %v176_v3  ;;  %v356_v10 = vld [vmem:[%s479_s2] ss:$0 sm:$0xff]  ;;  %s418_s7 = smov 32   ;;  %vm292_vm3 = vcmask 257024  }
  0x18   : > { %379 = vmatpush3.bf16.msra.mxu0 %v378_v5  ;;  %v173_v14 = vld [vmem:[%s450_s18] sm:$0xf] }
  0x19   : > { %380 = vmatprep.subr.bf16.mxu0 %v413_v4 }
  0x1c   : > { %382 = vmatpush3.bf16.msra.mxu0 %v381_v8 }
  0x1f   : > { %375 = vmatmul.mubr.msk.f32.vlgmr.msra.gmra.mrb[0].mxu0 %vm185_vm2, %v172_v9 }
  0xf2   : > { %v255_v11 = vpop.f32.mrb[0].mxu0 }
  0xf3   : > { %v256_v12 = vadd.f32 %v356_v10, %v255_v11  ;;  %v376_v13 = vpop.f32.mrb[1].mxu0 }
  0xf5   : > { %267 = vrot.lane.b32.xlu0 %v256_v12, %s416_s5  ;;  %v259_v15 = vadd.f32 %v256_v12, %v173_v14 }
  0xf7   : > { %v358_v16 = vmul.f32 -1.442695, %v259_v15 }
  0xf9   : > { %398 = vpow2.f32 %v358_v16 }
 0x103   : > { %v399_v17 = vpop.eup %398 }
 0x104   : > { %v263_v18 = vadd.f32 1.0, %v399_v17 }
 0x106   : > { %400 = vrcp.f32 %v263_v18 }
 0x110   : > { %v401_v19 = vpop.eup %400 }
 0x111   : > { %v277_v26 = vsub.f32 1.0, %v401_v19 }
 0x167   : > { %v268_v20 = vpop.permute.xlu0 %267 }
 0x168   : > { %v270_v21 = vmul.f32 %v401_v19, %v268_v20 }
 0x16a   : > { %272 = vrot.lane.b32.xlu0 %v270_v21, %s416_s5 }
 0x1dc   : > { %v273_v22 = vpop.permute.xlu0 %272 }
 0x1dd   : > { %v275_v23 = vadd.f32 %v273_v22, %v173_v14 }
 0x1df   : > { %402 = vtanh.f32 %v275_v23 }
 0x1e9   : > { %v403_v24 = vpop.eup %402 }
 0x1ea   : > { %279 = vrot.lane.b32.xlu1 %v403_v24, %s417_s6 }
 0x1ee   : > { %283 = vrot.lane.b32.xlu1 %v172_v9, %s418_s7 }
 0x25c   : > { %v280_v25 = vpop.permute.xlu1 %279 }
 0x25d   : > { %v282_v28 = vmul.f32 %v280_v25, %v277_v26 }
 0x260   : > { %v284_v27 = vpop.permute.xlu1 %283 }
 0x261   : > { %v286_v29 = vmul.f32 %v401_v19, %v284_v27 }
 0x263   : > { %v287_v30 = vadd.f32 %v286_v29, %v282_v28 }
 0x265   : > { %289 = vrot.lane.b32.xlu0 %v287_v30, %s417_s6 }
 0x2d7   : > { %v290_v31 = vpop.permute.xlu0 %289 }
 0x2d8   : > { %293 = vst.msk [vmem:[#allocation2] sm:$0xf] %vm292_vm3, %v290_v31  ;;  %294 = vst.msk [vmem:[%s455_s21] sm:$0xf] %vm292_vm3, %v290_v31 }
 0x2d9 PF: > { %s13_s12 = sadd.s32 1, %s410_s12  }
 0x2da   : > { %p10_p5 = scmp.ge.s32.totalorder %s13_s12, 8  }
 0x2dc   :  { %12 = sbr.rel (!%p10_p5) target bundleno = 1 (0x1), region = 66 }

// kernel: seq2seq_forward.8
= control target key start
LH: loop header
LB: loop body
LE: loop exit
PB: predicated region body
PF: predicated region fallthrough
CT: control target
= control target key end

     0   :  { %s454_s12 = smov 0   ;;  %s492_s0 = inlined_call_operand.vmem [shape: f32[6,4,96], index: 0, kind: input, shape index: {}]   ;;  %s493_s1 = inlined_call_operand.vmem [shape: f32[32,96], index: 1, kind: input, shape index: {}]   ;;  %s494_s2 = inlined_call_operand.vmem [shape: f32[1,96], index: 2, kind: input, shape index: {}]   ;;  %s495_s3 = inlined_call_operand.vmem [shape: f32[6,4,32], index: 3, kind: output, shape index: {}]  }
   0x1 LB: > { %s363_s13 = sadd.s32 4294967295, %s425_s12   ;;  %p367_p0 = scmp.ge.s32.totalorder %s425_s12, 1  ;;  %s425_s12 = sphi %s454_s12, %s13_s12  }
   0x2   : > { %p142_p1 = scmp.lt.s32.totalorder %s425_s12, 7 }
   0x4   : > { %p143_p2 = pnand %p367_p0, %p142_p1 }
   0x5   : > { %s166_s14 = ssub.s32 (!%p143_p2), 5, %s363_s13  ;;  %p370_p4 = scmp.ne.s32.totalorder (!%p143_p2), %s363_s13, 0 }
   0x6   : > { %146 = sbr.rel (%p143_p2) target bundleno = 728 (0x2d8), region = 32  ;;  %p167_p3 = scmp.lt.s32.totalorder (!%p143_p2), %s166_s14, 5 }
   0xd   : > { %s497_s14 = smov (!%p167_p3, %s166_s14), 5  ;;  %181 = sbr.rel (%p370_p4) target bundleno = 20 (0x14), region = 36 }
   0xe   : > { %s368_s15 = sshll.u32 %s497_s14, 2  ;;  %vm182_vm0 = vcmask (!%p370_p4), 257024   ;;  %v427_v0 = vmov (!%p370_p4), 0.0  }
   0xf   : > { %s465_s18 = scalar_lea.vmem %s492_s0, %s368_s15  ;;  %s470_s21 = scalar_lea.vmem %s495_s3, %s368_s15  ;;  %183 = vst.msk [vmem:[#allocation2] sm:$0xf] (!%p370_p4), %vm182_vm0, %v427_v0 }
  0x14 PF: > { %v186_v1 = vld [vmem:[%s493_s1] sm:$0xff]  ;;  %v187_v2 = vld [vmem:[%s493_s1 + $0x8] sm:$0xff]  ;;  %v188_v3 = vld [vmem:[%s493_s1 + $0x10] sm:$0xff]  ;;  %v428_v4 = vmov 0.0|0.0   ;;  %vm429_vm1 = vmmov 0   ;;  %v430_v7 = vmov 0.0  }
  0x15   : > { %392 = vmatprep.subr.bf16.mxu0 %v428_v4  ;;  %v393_v5 = vpack.c.bf16 %v187_v2, %v186_v1  ;;  %v189_v6 = vld [vmem:[%s493_s1 + $0x18] sm:$0xff]  ;;  %389 = vmatprep.mubr.msk.f32.mxu0 %vm429_vm1, %v430_v7  ;;  %vm197_vm2 = vcmask 261120   ;;  %v371_v10 = vld [vmem:[%s494_s2] ss:$0 sm:$0xff]  ;;  %s431_s5 = smov 64   ;;  %s432_s6 = smov 96  }
  0x16   : > { %v396_v8 = vpack.c.bf16 %v189_v6, %v188_v3  ;;  %v184_v9 = vld [vmem:[#allocation2] sm:$0xf]  ;;  %s433_s7 = smov 32   ;;  %vm304_vm3 = vcmask 257024  }
  0x17   : > { %394 = vmatpush3.bf16.msra.mxu0 %v393_v5  ;;  %v185_v14 = vld [vmem:[%s465_s18] sm:$0xf] }
  0x18   : > { %395 = vmatprep.subr.bf16.mxu0 %v428_v4 }
  0x1b   : > { %397 = vmatpush3.bf16.msra.mxu0 %v396_v8 }
  0x1e   : > { %390 = vmatmul.mubr.msk.f32.vlgmr.msra.gmra.mrb[0].mxu0 %vm197_vm2, %v184_v9 }
  0xf1   : > { %v267_v11 = vpop.f32.mrb[0].mxu0 }
  0xf2   : > { %v268_v12 = vadd.f32 %v371_v10, %v267_v11  ;;  %v391_v13 = vpop.f32.mrb[1].mxu0 }
  0xf4   : > { %279 = vrot.lane.b32.xlu0 %v268_v12, %s431_s5  ;;  %v271_v15 = vadd.f32 %v268_v12, %v185_v14 }
  0xf6   : > { %v373_v16 = vmul.f32 -1.442695, %v271_v15 }
  0xf8   : > { %413 = vpow2.f32 %v373_v16 }
 0x102   : > { %v414_v17 = vpop.eup %413 }
 0x103   : > { %v275_v18 = vadd.f32 1.0, %v414_v17 }
 0x105   : > { %415 = vrcp.f32 %v275_v18 }
 0x10f   : > { %v416_v19 = vpop.eup %415 }
 0x110   : > { %v289_v26 = vsub.f32 1.0, %v416_v19 }
 0x166   : > { %v280_v20 = vpop.permute.xlu0 %279 }
 0x167   : > { %v282_v21 = vmul.f32 %v416_v19, %v280_v20 }
 0x169   : > { %284 = vrot.lane.b32.xlu0 %v282_v21, %s431_s5 }
 0x1db   : > { %v285_v22 = vpop.permute.xlu0 %284 }
 0x1dc   : > { %v287_v23 = vadd.f32 %v285_v22, %v185_v14 }
 0x1de   : > { %417 = vtanh.f32 %v287_v23 }
 0x1e8   : > { %v418_v24 = vpop.eup %417 }
 0x1e9   : > { %291 = vrot.lane.b32.xlu1 %v418_v24, %s432_s6 }
 0x1ed   : > { %295 = vrot.lane.b32.xlu1 %v184_v9, %s433_s7 }
 0x25b   : > { %v292_v25 = vpop.permute.xlu1 %291 }
 0x25c   : > { %v294_v28 = vmul.f32 %v292_v25, %v289_v26 }
 0x25f   : > { %v296_v27 = vpop.permute.xlu1 %295 }
 0x260   : > { %v298_v29 = vmul.f32 %v416_v19, %v296_v27 }
 0x262   : > { %v299_v30 = vadd.f32 %v298_v29, %v294_v28 }
 0x264   : > { %301 = vrot.lane.b32.xlu0 %v299_v30, %s432_s6 }
 0x2d6   : > { %v302_v31 = vpop.permute.xlu0 %301 }
 0x2d7   : > { %305 = vst.msk [vmem:[#allocation2] sm:$0xf] %vm304_vm3, %v302_v31  ;;  %306 = vst.msk [vmem:[%s470_s21] sm:$0xf] %vm304_vm3, %v302_v31 }
 0x2d8 PF: > { %s13_s12 = sadd.s32 1, %s425_s12  }
 0x2d9   : > { %p10_p5 = scmp.ge.s32.totalorder %s13_s12, 8  }
 0x2db   :  { %12 = sbr.rel (!%p10_p5) target bundleno = 1 (0x1), region = 66 }

// kernel: seq2seq_forward.6
= control target key start
LH: loop header
LB: loop body
LE: loop exit
PB: predicated region body
PF: predicated region fallthrough
CT: control target
= control target key end

     0   :  { %v147_v3 = vmov 0.0   ;;  %vm33_vm0 = vcmask 130048   ;;  %v23_v10 = vlaneseq  ;;  %vm127_vm1 = vcmask 523264   ;;  %s210_s1 = inlined_call_operand.vmem [shape: f32[16,192], index: 1, kind: input, shape index: {}]   ;;  %s211_s0 = inlined_call_operand.vmem [shape: f32[24,16], index: 0, kind: input, shape index: {}]   ;;  %s212_s2 = inlined_call_operand.vmem [shape: f32[1,192], index: 2, kind: input, shape index: {}]   ;;  %s213_s3 = inlined_call_operand.vmem [shape: f32[24,192], index: 3, kind: output, shape index: {}]  }
   0x1   :  { %v18_v0 = vld [vmem:[%s210_s1 + $0x8] sm:$0xff]  ;;  %v20_v1 = vld [vmem:[%s210_s1 + $0x18] sm:$0xff]  ;;  %v17_v2 = vld [vmem:[%s210_s1] sm:$0xff]  ;;  %113 = vmatprep.mubr.f32.mxu1 %v147_v3  ;;  %107 = vmatprep.mubr.f32.mxu0 %v147_v3 }
   0x2   :  { %v140_v4 = vpack.c.bf16 %v20_v1, %v18_v0  ;;  %v19_v5 = vld [vmem:[%s210_s1 + $0x10] sm:$0xff]  ;;  %v15_v7 = vld [vmem:[%s211_s0 + $0x8] sm:$0xff]  ;;  %v14_v8 = vld [vmem:[%s211_s0] sm:$0xff]  ;;  %v24_v11 = vshrl.u32 %v23_v10, 7 }
   0x3   :  { %v142_v6 = vpack.c.bf16 %v19_v5, %v17_v2  ;;  %v16_v9 = vld [vmem:[%s211_s0 + $0x10] sm:$0xff]  ;;  %v21_v13 = vld [vmem:[%s212_s2] sm:$0x3] }
   0x4   :  { %144 = vmatprep.subr.bf16.mxu1 %v140_v4  ;;  %141 = vmatprep.subr.bf16.mxu0 %v140_v4  ;;  %v25_v12 = vsub.s32 0, %v24_v11  ;;  %v29_v14 = vsub.s32 1, %v24_v11 }
   0x5   :  { %145 = vmatpush1.bf16.msra.mxu1 %v142_v6  ;;  %143 = vmatpush1.bf16.msra.mxu0 %v142_v6 }
   0x6   :  { %v26_v15 = vrot.slane %v21_v13, %v25_v12  ;;  %v30_v16 = vrot.slane %v21_v13, %v29_v14 }
   0x8   :  { %138 = vmatmul.mubr.msk.f32.vlgmr.msra.gmra.mrb[0].mxu1 %vm33_vm0, %v15_v7  ;;  %137 = vmatmul.mubr.msk.f32.vlgmr.msra.gmra.mrb[0].mxu0 %vm33_vm0, %v14_v8 }
   0x9   :  { %119 = vmatprep.mubr.f32.mxu1 %v147_v3 }
   0xc   :  { %139 = vmatmul.mubr.msk.f32.gmra.mrb[2].mxu1 %vm33_vm0, %v16_v9 }
  0xdb   :  { %v115_v17 = vpop.f32.mrb[0].mxu1  ;;  %v109_v18 = vpop.f32.mrb[0].mxu0 }
  0xdc   :  { %v116_v19 = vadd.f32 %v115_v17, %v26_v15  ;;  %v117_v20 = vpop.f32.mrb[1].mxu1  ;;  %v110_v21 = vadd.f32 %v109_v18, %v26_v15  ;;  %v111_v22 = vpop.f32.mrb[1].mxu0 }
  0xdd   :  { %v118_v23 = vadd.f32 %v117_v20, %v30_v16  ;;  %v112_v24 = vadd.f32 %v111_v22, %v30_v16 }
  0xde   :  { %129 = vst [vmem:[%s213_s3 + $0x10] sm:$0xff] %v116_v19  ;;  %126 = vst [vmem:[%s213_s3] sm:$0xff] %v110_v21 }
  0xdf   :  { %130 = vst.msk [vmem:[%s213_s3 + $0x18] sm:$0xff] %vm127_vm1, %v118_v23  ;;  %128 = vst.msk [vmem:[%s213_s3 + $0x8] sm:$0xff] %vm127_vm1, %v112_v24  ;;  %v121_v25 = vpop.f32.mrb[2].mxu1 }
  0xe0   :  { %v122_v26 = vadd.f32 %v121_v25, %v26_v15  ;;  %v123_v27 = vpop.f32.mrb[3].mxu1 }
  0xe1   :  { %v124_v28 = vadd.f32 %v123_v27, %v30_v16 }
  0xe2   :  { %131 = vst [vmem:[%s213_s3 + $0x20] sm:$0xff] %v122_v26 }
  0xe3   :  { %132 = vst.msk [vmem:[%s213_s3 + $0x28] sm:$0xff] %vm127_vm1, %v124_v28 }

// kernel: seq2seq_forward.10
= control target key start
LH: loop header
LB: loop body
LE: loop exit
PB: predicated region body
PF: predicated region fallthrough
CT: control target
= control target key end

     0   :  { %v193_v0 = vmov 0.0|0.0   ;;  %vm194_vm0 = vmmov 0   ;;  %v195_v6 = vmov 0.0   ;;  %vm32_vm1 = vcmask 523264   ;;  %s264_s1 = inlined_call_operand.vmem [shape: f32[64,32], index: 1, kind: input, shape index: {}]   ;;  %s265_s0 = inlined_call_operand.vmem [shape: f32[24,64], index: 0, kind: input, shape index: {}]   ;;  %s266_s2 = inlined_call_operand.vmem [shape: f32[1,32], index: 2, kind: input, shape index: {}]   ;;  %s267_s3 = inlined_call_operand.vmem [shape: f32[24,32], index: 3, kind: output, shape index: {}]  }
   0x1   :  { %182 = vmatprep.subr.bf16.mxu1 %v193_v0  ;;  %v17_v1 = vld [vmem:[%s264_s1] sm:$0xff]  ;;  %v18_v2 = vld [vmem:[%s264_s1 + $0x8] sm:$0xff]  ;;  %170 = vmatprep.subr.bf16.mxu0 %v193_v0  ;;  %v19_v3 = vld [vmem:[%s264_s1 + $0x10] sm:$0xff]  ;;  %vm122_vm2 = vcmask 261120  }
   0x2   :  { %v171_v4 = vpack.c.bf16 %v18_v2, %v17_v1  ;;  %v20_v5 = vld [vmem:[%s264_s1 + $0x18] sm:$0xff]  ;;  %164 = vmatprep.mubr.msk.f32.mxu1 %vm194_vm0, %v195_v6  ;;  %161 = vmatprep.mubr.msk.f32.mxu0 %vm194_vm0, %v195_v6  ;;  %v21_v8 = vld [vmem:[%s264_s1 + $0x20] sm:$0xff]  ;;  %v22_v9 = vld [vmem:[%s264_s1 + $0x28] sm:$0xff] }
   0x3   :  { %v174_v7 = vpack.c.bf16 %v20_v5, %v19_v3  ;;  %v177_v10 = vpack.c.bf16 %v22_v9, %v21_v8  ;;  %v23_v11 = vld [vmem:[%s264_s1 + $0x30] sm:$0xff]  ;;  %v24_v12 = vld [vmem:[%s264_s1 + $0x38] sm:$0xff]  ;;  %v15_v14 = vld [vmem:[%s265_s0 + $0x8] sm:$0xff] }
   0x4   :  { %186 = vmatpush3.bf16.msra.mxu1 %v171_v4  ;;  %172 = vmatpush3.bf16.msra.mxu0 %v171_v4  ;;  %v180_v13 = vpack.c.bf16 %v24_v12, %v23_v11  ;;  %v14_v15 = vld [vmem:[%s265_s0] sm:$0xff]  ;;  %v16_v16 = vld [vmem:[%s265_s0 + $0x10] sm:$0xff] }
   0x5   :  { %183 = vmatprep.subr.bf16.mxu1 %v193_v0  ;;  %173 = vmatprep.subr.bf16.mxu0 %v193_v0  ;;  %v130_v17 = vld [vmem:[%s266_s2] ss:$0 sm:$0xff] }
   0x8   :  { %187 = vmatpush3.bf16.msra.mxu1 %v174_v7  ;;  %175 = vmatpush3.bf16.msra.mxu0 %v174_v7 }
   0x9   :  { %184 = vmatprep.subr.bf16.mxu1 %v193_v0  ;;  %176 = vmatprep.subr.bf16.mxu0 %v193_v0 }
   0xc   :  { %188 = vmatpush3.bf16.msra.mxu1 %v177_v10  ;;  %178 = vmatpush3.bf16.msra.mxu0 %v177_v10 }
   0xd   :  { %185 = vmatprep.subr.bf16.mxu1 %v193_v0  ;;  %179 = vmatprep.subr.bf16.mxu0 %v193_v0 }
  0x10   :  { %189 = vmatpush3.bf16.msra.mxu1 %v180_v13  ;;  %181 = vmatpush3.bf16.msra.mxu0 %v180_v13 }
  0x13   :  { %165 = vmatmul.mubr.msk.f32.vlgmr.msra.gmra.mrb[0].mxu1 %vm32_vm1, %v15_v14  ;;  %162 = vmatmul.mubr.msk.f32.vlgmr.msra.gmra.mrb[0].mxu0 %vm32_vm1, %v14_v15 }
  0x14   :  { %167 = vmatprep.mubr.msk.f32.mxu1 %vm194_vm0, %v195_v6 }
  0x17   :  { %168 = vmatmul.mubr.msk.f32.gmra.mrb[2].mxu1 %vm32_vm1, %v16_v16 }
  0xe6   :  { %v113_v18 = vpop.f32.mrb[0].mxu1  ;;  %v108_v19 = vpop.f32.mrb[0].mxu0 }
  0xe7   :  { %v114_v20 = vadd.f32 %v130_v17, %v113_v18  ;;  %v166_v21 = vpop.f32.mrb[1].mxu1  ;;  %v109_v22 = vadd.f32 %v130_v17, %v108_v19  ;;  %v163_v23 = vpop.f32.mrb[1].mxu0 }
  0xe9   :  { %124 = vst.msk [vmem:[%s267_s3 + $0x8] sm:$0xff] %vm122_vm2, %v114_v20  ;;  %123 = vst.msk [vmem:[%s267_s3] sm:$0xff] %vm122_vm2, %v109_v22 }
  0xea   :  { %v118_v24 = vpop.f32.mrb[2].mxu1 }
  0xeb   :  { %v119_v25 = vadd.f32 %v130_v17, %v118_v24  ;;  %v169_v26 = vpop.f32.mrb[3].mxu1 }
  0xed   :  { %125 = vst.msk [vmem:[%s267_s3 + $0x10] sm:$0xff] %vm122_vm2, %v119_v25 }

// kernel: seq2seq_forward.11
= control target key start
LH: loop header
LB: loop body
LE: loop exit
PB: predicated region body
PF: predicated region fallthrough
CT: control target
= control target key end

     0   :  { %s2753_s0 = inlined_call_operand.vmem [shape: s32[5], index: 0, kind: input, shape index: {}]   ;;  %s2754_s1 = inlined_call_operand.vmem [shape: s32[5,4,1], index: 1, kind: input, shape index: {}]   ;;  %s2755_s2 = inlined_call_operand.vmem [shape: f32[4,32], index: 2, kind: input, shape index: {}]   ;;  %s2756_s3 = inlined_call_operand.vmem [shape: f32[4,6,64], index: 3, kind: input, shape index: {}]   ;;  %s2757_s4 = inlined_call_operand.vmem [shape: f32[4,6,32], index: 4, kind: input, shape index: {}]   ;;  %s2758_s5 = inlined_call_operand.vmem [shape: f32[10,16], index: 5, kind: input, shape index: {}]   ;;  %s2759_s6 = inlined_call_operand.vmem [shape: f32[32,32], index: 6, kind: input, shape index: {}]   ;;  %s2760_s7 = inlined_call_operand.vmem [shape: f32[1,32], index: 7, kind: input, shape index: {}]   ;;  %s2761_s8 = inlined_call_operand.vmem [shape: f32[16,96], index: 8, kind: input, shape index: {}]   ;;  %s2762_s9 = inlined_call_operand.vmem [shape: f32[64,96], index: 9, kind: input, shape index: {}]   ;;  %s2763_s10 = inlined_call_operand.vmem [shape: f32[1,96], index: 10, kind: input, shape index: {}]   ;;  %s2764_s11 = inlined_call_operand.vmem [shape: f32[32,96], index: 11, kind: input, shape index: {}]   ;;  %s2765_s12 = inlined_call_operand.vmem [shape: f32[1,96], index: 12, kind: input, shape index: {}]   ;;  %s2766_s13 = inlined_call_operand.vmem [shape: f32[32,10], index: 13, kind: input, shape index: {}]   ;;  %s2767_s14 = inlined_call_operand.vmem [shape: f32[64,10], index: 14, kind: input, shape index: {}]   ;;  %s2768_s15 = inlined_call_operand.vmem [shape: f32[16,10], index: 15, kind: input, shape index: {}]   ;;  %s2769_s16 = inlined_call_operand.vmem [shape: f32[1,10], index: 16, kind: input, shape index: {}]   ;;  %s2770_s17 = inlined_call_operand.hbm [shape: f32[5,4,10], index: 17, kind: output, shape index: {}]  }
   0x1   :  { %2776 = sst [smem:[#allocation14_spill]] %s2753_s0 }
   0x2   :  { %2777 = sst [smem:[#allocation15_spill]] %s2754_s1  ;;  %s2782_s26 = sld [smem:[#allocation14_spill]] }
   0x3   :  { %2778 = sst [smem:[#allocation16_spill]] %s2755_s2 }
   0x4   :  { %2779 = sst [smem:[#allocation17_spill]] %s2756_s3 }
   0x5   :  { %2780 = sst [smem:[#allocation18_spill]] %s2757_s4 }
   0x6   :  { %2781 = sst [smem:[#allocation19_spill]] %s2763_s10 }
   0x8   :  { %s22_s10 = sshll.u32 %s2782_s26, 4  ;;  %s23_s10 = int_to_ptr.vmem [resolvable:$true] %s22_s10 }
   0x9   :  { %s2205_s27 = scalar_lea.vmem %s23_s10, 16  ;;  %p2210_p1 = scmp.lt.s32.totalorder %s23_s10, %s23_s10 }
   0xa   :  { %p2206_p0 = scmp.ne.s32.totalorder %s23_s10, %s2205_s27  ;;  %p2211_p2 = scmp.lt.s32.totalorder %s2205_s27, %s2205_s27 }
   0xc   :  { %p2212_p3 = por %p2211_p2, %p2210_p1 }
   0xe   :  { %p2213_p4 = pnand %p2212_p3, %p2206_p0 }
  0x10   :  { %2216 = shalt.err (!%p2213_p4)  }
  0x11   :  { %s2283_s28 = smov [#allocation5]  }
  0x12   :  { %25 = dma.vmem_to_smem %s23_s10, 16, %s2283_s28, [#allocation4] }
  0x13   :  { %2261 = dma.done.wait [#allocation4], 16 }
  0x14   :  { %2262 = vsyncadd [#allocation4], 4294967280 }
  0x15   :  { %27 = sfence }
  0x16   :  { %28 = vsyncpa [#allocation7], 0 }
  0x17   :  { %30 = vsyncpa [#allocation7 + $0x1], 0  ;;  %s2387_s29 = smov 0   ;;  %s2389_s0 = smov 0  }
  0x18   :  { %s2391_s30 = smov 0   ;;  %s2393_s18 = smov 0  }
  0x19 LB: > { %2783 = sst [smem:[#allocation10_spill]] %s2277_s30  ;;  %s2408_s10 = sadd.s32 4294967295, %s2281_s18   ;;  %s2281_s18 = sphi %s2393_s18, %s2798_s18   ;;  %s2277_s30 = sphi %s2391_s30, %s2800_s30   ;;  %s2273_s0 = sphi %s2389_s0, %s2802_s0   ;;  %s2269_s29 = sphi %s2387_s29, %s2801_s29  }
  0x1a   : > { %s1874_s19 = sadd.s32 4294967294, %s2281_s18   ;;  %s2412_s1 = sadd.s32 1, %s2281_s18  }
  0x1b   : > { %2784 = sst [smem:[#allocation11_spill]] %s2412_s1  ;;  %s384_s20 = sadd.s32 1, %s2277_s30 }
  0x1c   : > { %s381_s21 = ssub.s32 %s2281_s18, %s2412_s1  ;;  %p394_p5 = scmp.ne.s32.totalorder %s2277_s30, %s2273_s0 }
  0x1d   : > { %p382_p6 = scmp.eq.s32.totalorder %s381_s21, 0  ;;  %p395_p7 = scmp.eq.s32.totalorder %s2408_s10, 4 }
  0x1e   : > { %p400_p8 = scmp.ne.s32.totalorder %s2273_s0, %s2269_s29  ;;  %p401_p9 = scmp.eq.s32.totalorder %s1874_s19, 4 }
  0x1f   : > { %s2423_s22 = scalar_select %p382_p6, %s2277_s30, %s384_s20  }
  0x20   : > { %p2425_p10 = por %p395_p7, %p394_p5  ;;  %p2429_p11 = por %p401_p9, %p400_p8 }
  0x21   : > { %2785 = sst [smem:[#allocation12_spill]] %s2423_s22  ;;  %p1877_p12 = scmp.ge.s32.totalorder %s2281_s18, 1 }
  0x22   : > { %s2787_s24 = scalar_select %p2429_p11, 1, 0 }
  0x23   : > { %p471_p13 = scmp.lt.s32.totalorder %s2281_s18, 6 }
  0x24   : > { %2788 = sst [smem:[#allocation13_spill]] %s2787_s24 }
  0x25   : > { %p472_p0 = pnand %p1877_p12, %p471_p13 }
  0x26   : > { %s2775_s25 = sand.u32 (!%p472_p0), 1, %s2273_s0   ;;  %p520_p1 = scmp.lt.s32.totalorder (!%p472_p0), %s2408_s10, 4 }
  0x27   : > { %475 = sbr.rel (%p472_p0) target bundleno = 2391 (0x957), region = 84  ;;  %s2439_s26 = sshll.u32 (!%p472_p0), %s2775_s25, 2 }
  0x28   : > { %s2789_s21 = sld [smem:[#allocation15_spill]] (!%p472_p0)  ;;  %p1880_p2 = scmp.ne.s32.totalorder (!%p472_p0), %s2408_s10, 0 }
  0x2e   : > { %s521_s27 = scalar_select %p520_p1, %s2408_s10, 4 }
  0x2f   : > { %527 = sbr.rel (%p1880_p2) target bundleno = 55 (0x37), region = 88  ;;  %vm529_vm0 = vcmask (!%p1880_p2), 3072   ;;  %s2790_s2 = sld [smem:[#allocation16_spill]] (!%p1880_p2)  ;;  %vm532_vm1 = vcmask (!%p1880_p2), 257024  }
  0x30   : > { %s1879_s28 = sshll.u32 %s521_s27, 2 }
  0x31   : > { %s2445_s22 = scalar_lea.vmem %s2789_s21, %s1879_s28 }
  0x32   : > { %v528_v0 = vld [vmem:[%s2445_s22] sm:$0xf] (!%p1880_p2) }
  0x33   : > { %530 = vst.msk [vmem:[#allocation2] sm:$0xf] (!%p1880_p2), %vm529_vm0, %v528_v0 }
  0x35   : > { %v531_v1 = vld [vmem:[%s2790_s2] sm:$0xf] (!%p1880_p2) }
  0x36   : > { %533 = vst.msk [vmem:[#allocation3] sm:$0xf] %vm532_vm1, %v531_v1 }
  0x37 PF: > { %v624_v2 = vld [vmem:[%s2759_s6] sm:$0xff]  ;;  %v625_v3 = vld [vmem:[%s2759_s6 + $0x8] sm:$0xff]  ;;  %v626_v4 = vld [vmem:[%s2759_s6 + $0x10] sm:$0xff]  ;;  %v2284_v5 = vmov 0.0|0.0   ;;  %vm2285_vm2 = vmmov 0   ;;  %v2286_v8 = vmov 0.0   ;;  %v536_v11 = vlaneseq }
  0x38   : > { %2074 = vmatprep.subr.bf16.mxu1 %v2284_v5  ;;  %v2075_v6 = vpack.c.bf16 %v625_v3, %v624_v2  ;;  %v627_v7 = vld [vmem:[%s2759_s6 + $0x18] sm:$0xff]  ;;  %1973 = vmatprep.mubr.msk.f32.mxu1 %vm2285_vm2, %v2286_v8  ;;  %vm628_vm3 = vcmask 261120   ;;  %v2287_v12 = vmov 1966171168   ;;  %s2791_s4 = sld [smem:[#allocation18_spill]]  ;;  %vm770_vm4 = vcmask 259072  }
  0x39   : > { %2070 = vmatprep.subr.bf16.mxu0 %v2284_v5  ;;  %1962 = vmatprep.mubr.msk.f32.mxu0 %vm2285_vm2, %v2286_v8  ;;  %v2078_v9 = vpack.c.bf16 %v627_v7, %v626_v4  ;;  %v708_v13 = vunpack.c.l.s4 %v2287_v12  ;;  %v2479_v15 = vshrl.u32 %v536_v11, 7  ;;  %v1885_v38 = vld [vmem:[%s2760_s7] ss:$0 sm:$0xff]  ;;  %v2504_v51 = vand.u32 127, %v536_v11  ;;  %s2792_s3 = sld [smem:[#allocation17_spill]]  ;;  %s2290_s28 = smov 64  }
  0x3a   : > { %2076 = vmatpush3.bf16.msra.mxu1 %v2075_v6  ;;  %vm803_vm5 = vcmask 1041409   ;;  %vm805_vm6 = vcmask 1042434   ;;  %vm807_vm7 = vcmask 1043459   ;;  %vm810_vm8 = vcmask 44032   ;;  %s2793_s21 = sld [smem:[#allocation19_spill]]  ;;  %s2794_s19 = scalar_lea.vmem [#allocation6], %s2439_s26 }
  0x3b   : > { %2077 = vmatprep.subr.bf16.mxu1 %v2284_v5  ;;  %v709_v14 = vunpack.c.0.s8 %v708_v13  ;;  %v2483_v19 = vsub.s32 0, %v2479_v15  ;;  %v2508_v53 = vsub.s32 %v2504_v51, %v2479_v15  ;;  %v2288_v1 = vmov 0   ;;  %s1905_s20 = sshll.u32 %s2408_s10, 6  ;;  %s2795_s30 = smov %s2794_s19 }
  0x3c   : > { %2174 = vset.pattern.permute.xlu0 %v2288_v1  ;;  %2173 = vset.pattern.permute.xlu1 %v2288_v1  ;;  %v821_v2 = vsub.s32 1, %v2479_v15  ;;  %v825_v3 = vsub.s32 2, %v2479_v15  ;;  %v829_v4 = vsub.s32 3, %v2479_v15  ;;  %vm550_vm9 = vcmask 1041408   ;;  %s2711_s2 = scalar_lea.hbm %s2770_s17, %s1905_s20  ;;  %s1815_s1 = sshll.u32 %s2795_s30, 4  ;;  %s1816_s1 = int_to_ptr.vmem [resolvable:$true] %s1815_s1 }
  0x3d   : > { %v2472_v10 = vld [vmem:[#allocation3] sm:$0xf]  ;;  %v712_v16 = vsub.s32 %v709_v14, %v2479_v15  ;;  %vm2289_vm10 = vmmov 1   ;;  %vm546_vm12 = vcmask 80896   ;;  %vm930_vm14 = vcmask 1045504   ;;  %s2796_s24 = sand.u32 1, %s2273_s0  }
  0x3e   : > { %2079 = vmatpush3.bf16.msra.mxu1 %v2078_v9  ;;  %v702_v23 = vld [vmem:[%s2791_s4] sm:$0x3f]  ;;  %v703_v27 = vld [vmem:[%s2791_s4 + $0x8] sm:$0x3f]  ;;  %v704_v28 = vld [vmem:[%s2791_s4 + $0x10] sm:$0x3f] }
  0x3f   : > { %1986 = vmatprep.subr.mxu1 %v2286_v8  ;;  %v705_v33 = vld [vmem:[%s2791_s4 + $0x18] sm:$0x3f]  ;;  %vm2072_vm11 = vmpackc.low %vm550_vm9, %vm2289_vm10  ;;  %vm927_vm15 = vcmask 48128   ;;  %vm1346_vm0 = vcmask 130048   ;;  %vm1273_vm1 = vcmask 523264   ;;  %s1802_s25 = scalar_lea.sflag [#allocation7], %s2796_s24 }
  0x40   : > { %s2217_s27 = scalar_lea.vmem %s1816_s1, 64 }
  0x41   : > { %1974 = vmatmul.mubr.msk.f32.vlgmr.msra.gmra.mrb[0].mxu1 %vm628_vm3, %v2472_v10  ;;  %p2218_p3 = scmp.ne.s32.totalorder %s1816_s1, %s2217_s27 }
  0x42   : > { %1988 = vmatprep.mubr.msk.f32.mxu1 %vm2285_vm2, %v2286_v8 }
  0x43   : > { %p2219_p4 = pnand %p2218_p3, %p2425_p10 }
  0x45   : > { %p2220_p5 = pneg %p2219_p4 }
 0x114   : > { %v698_v17 = vpop.f32.mrb[0].mxu1 }
 0x115   : > { %v713_v18 = vrot.slane %v698_v17, %v712_v16  ;;  %v1975_v20 = vpop.f32.mrb[1].mxu1 }
 0x117   : > { %v714_v21 = vcombine.high %v713_v18, %v713_v18  ;;  %v721_v22 = vrot.slane %v713_v18, %v712_v16 }
 0x119   : > { %v728_v24 = vrot.slane %v714_v21, %v712_v16  ;;  %v729_v25 = vcombine.high %v721_v22, %v721_v22  ;;  %v734_v26 = vrot.slane %v721_v22, %v2483_v19 }
 0x11b   : > { %v730_v29 = vcombine.high %v728_v24, %v728_v24  ;;  %v738_v30 = vrot.slane %v728_v24, %v2483_v19  ;;  %v742_v31 = vrot.slane %v729_v25, %v2483_v19  ;;  %v751_v32 = vadd.f32 %v734_v26, %v702_v23  ;;  %v534_v24 = vld [vmem:[#allocation2] sm:$0xf] }
 0x11c   : > { %v544_v26 = vld [vmem:[%s2758_s5] sm:$0xff] }
 0x11d   : > { %v746_v34 = vrot.slane %v730_v29, %v2483_v19  ;;  %v752_v35 = vadd.f32 %v738_v30, %v703_v27  ;;  %v753_v36 = vadd.f32 %v742_v31, %v704_v28  ;;  %2175 = vtanh.f32 %v751_v32  ;;  %v545_v27 = vld [vmem:[%s2758_s5 + $0x8] sm:$0x3] }
 0x11e   : > { %v2071_v28 = vpack.c.bf16 %v545_v27, %v544_v26  ;;  %v1257_v26 = vld [vmem:[%s2762_s9 + $0x10] sm:$0xff]  ;;  %v1258_v27 = vld [vmem:[%s2762_s9 + $0x18] sm:$0xff] }
 0x11f   : > { %v754_v37 = vadd.f32 %v746_v34, %v705_v33  ;;  %2177 = vtanh.f32 %v752_v35 }
 0x120   : > { %2179 = vtanh.f32 %v753_v36  ;;  %2073 = vmatpush3.bf16.msk.msra.mxu0 %vm2072_vm11, %v2071_v28  ;;  %v1544_v28 = vld [vmem:[%s2767_s14 + $0x10] sm:$0xff] }
 0x121   : > { %2181 = vtanh.f32 %v754_v37  ;;  %1976 = vmatprep.subr.mxu0 %v2286_v8 }
 0x127   : > { %v2176_v39 = vpop.eup %2175 }
 0x128   : > { %v766_v40 = vmul.f32 %v2176_v39, %v1885_v38 }
 0x129   : > { %v2178_v41 = vpop.eup %2177 }
 0x12a   : > { %v2180_v42 = vpop.eup %2179  ;;  %v771_v43 = vsel %vm770_vm4, %v766_v40, 0.0  ;;  %v767_v44 = vmul.f32 %v2178_v41, %v1885_v38 }
 0x12b   : > { %v2182_v45 = vpop.eup %2181  ;;  %772 = vadd.xlane.f32.xlu0 %v771_v43  ;;  %v768_v46 = vmul.f32 %v2180_v42, %v1885_v38 }
 0x12c   : > { %v769_v48 = vmul.f32 %v2182_v45, %v1885_v38  ;;  %v774_v49 = vsel %vm770_vm4, %v767_v44, 0.0 }
 0x12d   : > { %v777_v47 = vsel %vm770_vm4, %v768_v46, 0.0 }
 0x12e   : > { %778 = vadd.xlane.f32.xlu1 %v777_v47  ;;  %v780_v50 = vsel %vm770_vm4, %v769_v48, 0.0  ;;  %vm1799_vm4 = vcmask 257024  }
 0x12f   : > { %775 = vadd.xlane.f32.xlu0 %v774_v49 }
 0x132   : > { %781 = vadd.xlane.f32.xlu1 %v780_v50 }
 0x1b8   : > { %v773_v52 = vpop.xlane.xlu0 %772 }
 0x1b9   : > { %v790_v56 = vrot.slane %v773_v52, %v2508_v53 }
 0x1bb   : > { %v779_v54 = vpop.xlane.xlu1 %778 }
 0x1bc   : > { %v776_v55 = vpop.xlane.xlu0 %775  ;;  %v798_v58 = vrot.slane %v779_v54, %v2508_v53 }
 0x1bd   : > { %v794_v57 = vrot.slane %v776_v55, %v2508_v53 }
 0x1bf   : > { %v782_v59 = vpop.xlane.xlu1 %781  ;;  %v804_v60 = vsel %vm803_vm5, %v794_v57, %v790_v56 }
 0x1c0   : > { %v802_v61 = vrot.slane %v782_v59, %v2508_v53  ;;  %v806_v62 = vsel %vm805_vm6, %v798_v58, %v804_v60 }
 0x1c2   : > { %v808_v63 = vsel %vm807_vm7, %v802_v61, %v806_v62 }
 0x1c3   : > { %v811_v0 = vsel %vm810_vm8, %v808_v63, -inf }
 0x1c4   : > { %812 = vmax.xlane.f32.xlu0 %v811_v0  ;;  %v916_v0 = vld [vmem:[%s2792_s3 + $0x8] sm:$0x3f] }
 0x251   : > { %v813_v6 = vpop.xlane.xlu0 %812 }
 0x252   : > { %v818_v7 = vrot.slane %v813_v6, %v2483_v19  ;;  %v822_v9 = vrot.slane %v813_v6, %v821_v2  ;;  %v826_v11 = vrot.slane %v813_v6, %v825_v3  ;;  %v830_v12 = vrot.slane %v813_v6, %v829_v4  ;;  %v1254_v6 = vld [vmem:[%s2761_s8 + $0x8] sm:$0xff] }
 0x254   : > { %v835_v13 = vsub.f32 %v773_v52, %v818_v7  ;;  %v836_v14 = vsub.f32 %v776_v55, %v822_v9  ;;  %v837_v16 = vsub.f32 %v779_v54, %v826_v11  ;;  %v838_v20 = vsub.f32 %v782_v59, %v830_v12  ;;  %v917_v59 = vld [vmem:[%s2792_s3 + $0x10] sm:$0x3f]  ;;  %v1255_v9 = vld [vmem:[%s2762_s9] sm:$0xff]  ;;  %v1256_v11 = vld [vmem:[%s2762_s9 + $0x8] sm:$0xff] }
 0x255   : > { %1987 = vmatpush3.msk.msra.mxu1 %vm930_vm14, %v917_v59 }
 0x256   : > { %v839_v17 = vmul.f32 1.442695, %v835_v13  ;;  %v841_v18 = vmul.f32 1.442695, %v836_v14  ;;  %v843_v21 = vmul.f32 1.442695, %v837_v16  ;;  %2080 = vmatprep.subr.bf16.mxu1 %v2284_v5 }
 0x257   : > { %v845_v22 = vmul.f32 1.442695, %v838_v20  ;;  %v2081_v20 = vpack.c.bf16 %v1256_v11, %v1255_v9 }
 0x258   : > { %2183 = vpow2.f32 %v839_v17  ;;  %v1428_v17 = vld [vmem:[%s2764_s11] sm:$0xff] }
 0x259   : > { %2185 = vpow2.f32 %v841_v18  ;;  %v1429_v18 = vld [vmem:[%s2764_s11 + $0x8] sm:$0xff] }
 0x25a   : > { %2187 = vpow2.f32 %v843_v21  ;;  %v1430_v21 = vld [vmem:[%s2764_s11 + $0x10] sm:$0xff] }
 0x25b   : > { %2189 = vpow2.f32 %v845_v22  ;;  %v1431_v22 = vld [vmem:[%s2764_s11 + $0x18] sm:$0xff] }
 0x262   : > { %v2184_v23 = vpop.eup %2183 }
 0x263   : > { %v2186_v15 = vpop.eup %2185  ;;  %852 = vperm.xlu1 %2173, %v2184_v23  }
 0x264   : > { %855 = vperm.xlu0 %2174, %v2186_v15   ;;  %v2188_v25 = vpop.eup %2187 }
 0x265   : > { %v2190_v29 = vpop.eup %2189 }
 0x267   : > { %858 = vperm.xlu1 %2173, %v2188_v25  }
 0x268   : > { %539 = vperm.xlu0 %2174, %v534_v24   ;;  %v1543_v24 = vld [vmem:[%s2767_s14 + $0x8] sm:$0xff] }
 0x26b   : > { %861 = vperm.xlu1 %2173, %v2190_v29  }
 0x2e2   : > { %v853_v30 = vpop.permute.xlu1 %852 }
 0x2e3   : > { %v856_v31 = vpop.permute.xlu0 %855  ;;  %v866_v34 = vrot.slane %v853_v30, %v2508_v53  ;;  %v1545_v30 = vld [vmem:[%s2767_s14 + $0x18] sm:$0xff] }
 0x2e4   : > { %v870_v33 = vrot.slane %v856_v31, %v2508_v53  ;;  %v2105_v31 = vpack.c.bf16 %v1545_v30, %v1544_v28 }
 0x2e6   : > { %v859_v32 = vpop.permute.xlu1 %858  ;;  %v879_v39 = vsel %vm803_vm5, %v870_v33, %v866_v34  ;;  %v1260_v33 = vld [vmem:[%s2762_s9 + $0x28] sm:$0xff]  ;;  %v1546_v34 = vld [vmem:[%s2767_s14 + $0x20] sm:$0xff] }
 0x2e7   : > { %v540_v35 = vpop.permute.xlu0 %539  ;;  %v874_v36 = vrot.slane %v859_v32, %v2508_v53  ;;  %v1259_v32 = vld [vmem:[%s2762_s9 + $0x20] sm:$0xff] }
 0x2e8   : > { %vm541_vm13 = vcmp.eq.s32.totalorder %v2504_v51, %v540_v35  ;;  %v2087_v35 = vpack.c.bf16 %v1260_v33, %v1259_v32 }
 0x2e9   : > { %v1881_v37 = vsel %vm541_vm13, 1.0, %v2286_v8  ;;  %v880_v41 = vsel %vm805_vm6, %v874_v36, %v879_v39  ;;  %v1547_v36 = vld [vmem:[%s2767_s14 + $0x28] sm:$0xff]  ;;  %v1262_v39 = vld [vmem:[%s2762_s9 + $0x38] sm:$0xff] }
 0x2ea   : > { %v862_v38 = vpop.permute.xlu1 %861  ;;  %1963 = vmatmul.mubr.msk.f32.vlgmr.msra.gmra.mrb[0].mxu0 %vm546_vm12, %v1881_v37  ;;  %v2108_v37 = vpack.c.bf16 %v1547_v36, %v1546_v34  ;;  %v1695_v34 = vld [vmem:[%s2768_s15] sm:$0xff] }
 0x2eb   : > { %v878_v40 = vrot.slane %v862_v38, %v2508_v53  ;;  %1978 = vmatprep.mubr.msk.f32.mxu0 %vm2285_vm2, %v2286_v8  ;;  %v1261_v38 = vld [vmem:[%s2762_s9 + $0x30] sm:$0xff] }
 0x2ed   : > { %v881_v42 = vsel %vm807_vm7, %v878_v40, %v880_v41  ;;  %v1548_v40 = vld [vmem:[%s2767_s14 + $0x30] sm:$0xff]  ;;  %v2090_v41 = vpack.c.bf16 %v1262_v39, %v1261_v38 }
 0x2ee   : > { %v883_v43 = vsel %vm810_vm8, %v881_v42, 0.0  ;;  %v1549_v42 = vld [vmem:[%s2767_s14 + $0x38] sm:$0xff] }
 0x2ef   : > { %884 = vadd.xlane.f32.xlu1 %v883_v43  ;;  %v2111_v43 = vpack.c.bf16 %v1549_v42, %v1548_v40  ;;  %v1903_v40 = vld [vmem:[%s2769_s16] ss:$0 sm:$0xff] }
 0x37c   : > { %v885_v44 = vpop.xlane.xlu1 %884 }
 0x37d   : > { %v890_v45 = vrot.slane %v885_v44, %v2483_v19  ;;  %v894_v46 = vrot.slane %v885_v44, %v821_v2  ;;  %v902_v47 = vrot.slane %v885_v44, %v829_v4  ;;  %v898_v48 = vrot.slane %v885_v44, %v825_v3  ;;  %v915_v19 = vld [vmem:[%s2792_s3] sm:$0x3f]  ;;  %v918_v3 = vld [vmem:[%s2792_s3 + $0x18] sm:$0x3f] }
 0x37e   : > { %1977 = vmatpush3.msk.msra.mxu0 %vm930_vm14, %v915_v19  ;;  %v1253_v4 = vld [vmem:[%s2761_s8] sm:$0xff] }
 0x37f   : > { %2191 = vrcp.f32 %v890_v45  ;;  %1981 = vmatprep.subr.mxu0 %v2286_v8  ;;  %v2093_v13 = vpack.c.bf16 %v1254_v6, %v1253_v4 }
 0x380   : > { %2193 = vrcp.f32 %v894_v46 }
 0x381   : > { %2195 = vrcp.f32 %v902_v47 }
 0x382   : > { %2197 = vrcp.f32 %v898_v48 }
 0x389   : > { %v2192_v49 = vpop.eup %2191 }
 0x38a   : > { %v908_v50 = vmul.f32 %v2192_v49, %v2184_v23  ;;  %v2194_v52 = vpop.eup %2193  ;;  %v2099_v23 = vpack.c.bf16 %v1431_v22, %v1430_v21  ;;  %v1538_v22 = vld [vmem:[%s2766_s13] sm:$0xff] }
 0x38b   : > { %v2196_v54 = vpop.eup %2195  ;;  %v910_v56 = vmul.f32 %v2194_v52, %v2186_v15  ;;  %v1542_v15 = vld [vmem:[%s2767_s14] sm:$0xff] }
 0x38c   : > { %921 = vperm.xlu0 %2174, %v908_v50   ;;  %v914_v55 = vmul.f32 %v2196_v54, %v2190_v29  ;;  %v2198_v57 = vpop.eup %2197  ;;  %v2084_v29 = vpack.c.bf16 %v1258_v27, %v1257_v26 }
 0x38d   : > { %v912_v58 = vmul.f32 %v2198_v57, %v2188_v25  ;;  %v2102_v25 = vpack.c.bf16 %v1543_v24, %v1542_v15  ;;  %v1540_v15 = vld [vmem:[%s2766_s13 + $0x10] sm:$0xff] }
 0x38e   : > { %1172 = vperm.xlu1 %2173, %v914_v55  }
 0x390   : > { %1006 = vperm.xlu0 %2174, %v910_v56  }
 0x394   : > { %1089 = vperm.xlu0 %2174, %v912_v58  }
 0x3bd   : > { %v2552_v60 = vpop.f32.mrb[0].mxu0 }
 0x3be   : > { %v1964_v61 = vpop.f32.mrb[1].mxu0 }
 0x40b   : > { %v922_v62 = vpop.permute.xlu0 %921 }
 0x40c   : > { %v926_v63 = vrot.slane %v922_v62, %v2508_v53  ;;  %v1897_v62 = vld [vmem:[%s2765_s12] ss:$0 sm:$0xff] }
 0x40d   : > { %v1173_v7 = vpop.permute.xlu1 %1172 }
 0x40e   : > { %1979 = vmatmul.mubr.msk.f32.vlgmr.msra.gmra.mrb[2].mxu0 %vm927_vm15, %v926_v63  ;;  %v1177_v14 = vrot.slane %v1173_v7, %v2508_v53 }
 0x40f   : > { %1982 = vmatpush3.msk.msra.mxu0 %vm930_vm14, %v916_v0  ;;  %v1007_v1 = vpop.permute.xlu0 %1006  ;;  %1983 = vmatprep.mubr.msk.f32.mxu0 %vm2285_vm2, %v2286_v8 }
 0x410   : > { %v1011_v2 = vrot.slane %v1007_v1, %v2508_v53  ;;  %1991 = vmatprep.subr.mxu0 %v2286_v8 }
 0x412   : > { %1984 = vmatmul.mubr.msk.f32.vlgmr.msra.gmra.mrb[4].mxu0 %vm927_vm15, %v1011_v2 }
 0x413   : > { %1992 = vmatpush3.msk.msra.mxu0 %vm930_vm14, %v918_v3  ;;  %v1090_v12 = vpop.permute.xlu0 %1089  ;;  %1993 = vmatprep.mubr.msk.f32.mxu0 %vm2285_vm2, %v2286_v8  ;;  %v1896_v3 = vld [vmem:[%s2793_s21] ss:$0 sm:$0xff]  ;;  %s2292_s21 = smov 32  }
 0x414   : > { %v1094_v16 = vrot.slane %v1090_v12, %v2508_v53  ;;  %2092 = vmatprep.subr.bf16.mxu0 %v2284_v5  ;;  %v2096_v53 = vpack.c.bf16 %v1429_v18, %v1428_v17 }
 0x416   : > { %1989 = vmatmul.mubr.msk.f32.vlgmr.msra.gmra.mrb[2].mxu1 %vm927_vm15, %v1094_v16  ;;  %1994 = vmatmul.mubr.msk.f32.vlgmr.msra.gmra.mrb[6].mxu0 %vm927_vm15, %v1177_v14 }
 0x417   : > { %2094 = vmatpush3.bf16.msra.mxu0 %v2093_v13  ;;  %2019 = vmatprep.mubr.msk.f32.mxu0 %vm2285_vm2, %v2286_v8 }
 0x418   : > { %2095 = vmatprep.subr.bf16.mxu0 %v2284_v5  ;;  %2082 = vmatpush3.bf16.msra.mxu1 %v2081_v20 }
 0x419   : > { %2083 = vmatprep.subr.bf16.mxu1 %v2284_v5  ;;  %2012 = vmatprep.mubr.msk.f32.mxu1 %vm2285_vm2, %v2286_v8 }
 0x41a   : > { %2020 = vmatmul.mubr.msk.f32.vlgmr.msra.gmra.mrb[8].mxu0 %vm1346_vm0, %v2552_v60 }
 0x41b   : > { %2097 = vmatpush3.bf16.msra.mxu0 %v2096_v53  ;;  %2030 = vmatprep.mubr.msk.f32.mxu0 %vm2285_vm2, %v2286_v8 }
 0x41c   : > { %2098 = vmatprep.subr.bf16.mxu0 %v2284_v5  ;;  %2085 = vmatpush3.bf16.msra.mxu1 %v2084_v29 }
 0x41d   : > { %2086 = vmatprep.subr.bf16.mxu1 %v2284_v5 }
 0x41f   : > { %2100 = vmatpush3.bf16.msra.mxu0 %v2099_v23  ;;  %v1539_v23 = vld [vmem:[%s2766_s13 + $0x8] sm:$0xff] }
 0x420   : > { %2101 = vmatprep.subr.bf16.mxu0 %v2284_v5  ;;  %2088 = vmatpush3.bf16.msra.mxu1 %v2087_v35  ;;  %v2114_v24 = vpack.c.bf16 %v1539_v23, %v1538_v22  ;;  %v1696_v35 = vld [vmem:[%s2768_s15 + $0x8] sm:$0xff] }
 0x421   : > { %2089 = vmatprep.subr.bf16.mxu1 %v2284_v5 }
 0x422   : > { %2031 = vmatmul.mubr.msk.f32.vlgmr.msra.gmra.mrb[10].mxu0 %vm628_vm3, %v2472_v10 }
 0x423   : > { %2103 = vmatpush3.bf16.msra.mxu0 %v2102_v25  ;;  %2049 = vmatprep.mubr.msk.f32.mxu0 %vm2285_vm2, %v2286_v8  ;;  %v1541_v25 = vld [vmem:[%s2766_s13 + $0x18] sm:$0xff] }
 0x424   : > { %2104 = vmatprep.subr.bf16.mxu0 %v2284_v5  ;;  %2091 = vmatpush3.bf16.msra.mxu1 %v2090_v41  ;;  %v2117_v26 = vpack.c.bf16 %v1541_v25, %v1540_v15 }
 0x425   : > { %2113 = vmatprep.subr.bf16.mxu1 %v2284_v5 }
 0x427   : > { %2106 = vmatpush3.bf16.msra.mxu0 %v2105_v31 }
 0x428   : > { %2107 = vmatprep.subr.bf16.mxu0 %v2284_v5 }
 0x42b   : > { %2109 = vmatpush3.bf16.msra.mxu0 %v2108_v37 }
 0x42c   : > { %2110 = vmatprep.subr.bf16.mxu0 %v2284_v5 }
 0x42f   : > { %2112 = vmatpush3.bf16.msra.mxu0 %v2111_v43 }
 0x4e1   : > { %v1000_v44 = vpop.f32.mrb[2].mxu0 }
 0x4e2   : > { %v1980_v45 = vpop.f32.mrb[3].mxu0 }
 0x4e5   : > { %v1083_v46 = vpop.f32.mrb[4].mxu0 }
 0x4e6   : > { %v1267_v47 = vrot.slane %v1083_v46, 7  ;;  %v1985_v48 = vpop.f32.mrb[5].mxu0 }
 0x4e8   : > { %v1268_v49 = vsel %vm803_vm5, %v1267_v47, %v1000_v44 }
 0x4e9   : > { %v1166_v50 = vpop.f32.mrb[2].mxu1  ;;  %v1249_v52 = vpop.f32.mrb[6].mxu0 }
 0x4ea   : > { %v1269_v54 = vrot.slane %v1166_v50, 6  ;;  %v1271_v55 = vrot.slane %v1249_v52, 5  ;;  %v1990_v56 = vpop.f32.mrb[3].mxu1  ;;  %v1995_v57 = vpop.f32.mrb[7].mxu0 }
 0x4ec   : > { %v1270_v19 = vsel %vm805_vm6, %v1269_v54, %v1268_v49 }
 0x4ed   : > { %v1272_v58 = vsel %vm807_vm7, %v1271_v55, %v1270_v19  ;;  %v1416_v59 = vpop.f32.mrb[8].mxu0 }
 0x4ee   : > { %2013 = vmatmul.mubr.msk.f32.vlgmr.msra.gmra.mrb[4].mxu1 %vm1273_vm1, %v1272_v58  ;;  %v2021_v61 = vpop.f32.mrb[9].mxu0  ;;  %2050 = vmatmul.mubr.msk.f32.vlgmr.msra.gmra.mrb[12].mxu0 %vm1273_vm1, %v1272_v58 }
 0x4ef   : > { %2060 = vmatprep.mubr.msk.f32.mxu1 %vm2285_vm2, %v2286_v8  ;;  %2115 = vmatpush3.bf16.msra.mxu1 %v2114_v24 }
 0x4f0   : > { %2116 = vmatprep.subr.bf16.mxu1 %v2284_v5 }
 0x4f3   : > { %2118 = vmatpush3.bf16.msra.mxu1 %v2117_v26 }
 0x4f4   : > { %2119 = vmatprep.subr.bf16.mxu1 %v2284_v5  ;;  %v2120_v5 = vpack.c.bf16 %v1696_v35, %v1695_v34 }
 0x4f5   : > { %v1505_v63 = vpop.f32.mrb[10].mxu0 }
 0x4f6   : > { %v1506_v0 = vadd.f32 %v1897_v62, %v1505_v63  ;;  %v2032_v1 = vpop.f32.mrb[11].mxu0 }
 0x4f8   : > { %1517 = vrot.lane.b32.xlu0 %v1506_v0, %s2290_s28 }
 0x56a   : > { %v1518_v17 = vpop.permute.xlu0 %1517 }
 0x5c1   : > { %v1342_v2 = vpop.f32.mrb[4].mxu1  ;;  %v1616_v4 = vpop.f32.mrb[12].mxu0 }
 0x5c2   : > { %v1417_v6 = vadd.f32 %v1416_v59, %v1342_v2  ;;  %v2014_v7 = vpop.f32.mrb[5].mxu1  ;;  %v2051_v9 = vpop.f32.mrb[13].mxu0 }
 0x5c4   : > { %v1427_v11 = vadd.f32 %v1896_v3, %v1417_v6 }
 0x5c6   : > { %v1509_v12 = vadd.f32 %v1506_v0, %v1427_v11 }
 0x5c8   : > { %v1899_v13 = vmul.f32 -1.442695, %v1509_v12 }
 0x5ca   : > { %2199 = vpow2.f32 %v1899_v13 }
 0x5d4   : > { %v2200_v14 = vpop.eup %2199 }
 0x5d5   : > { %v1513_v16 = vadd.f32 1.0, %v2200_v14 }
 0x5d7   : > { %2201 = vrcp.f32 %v1513_v16 }
 0x5e1   : > { %v2202_v18 = vpop.eup %2201 }
 0x5e2   : > { %v1520_v20 = vmul.f32 %v2202_v18, %v1518_v17  ;;  %v1527_v29 = vsub.f32 1.0, %v2202_v18 }
 0x5e4   : > { %1522 = vrot.lane.b32.xlu0 %v1520_v20, %s2290_s28  ;;  %s2291_s28 = smov 96  }
 0x656   : > { %v1523_v53 = vpop.permute.xlu0 %1522 }
 0x657   : > { %v1525_v21 = vadd.f32 %v1523_v53, %v1427_v11 }
 0x659   : > { %2203 = vtanh.f32 %v1525_v21 }
 0x663   : > { %v2204_v27 = vpop.eup %2203 }
 0x664   : > { %1529 = vrot.lane.b32.xlu0 %v2204_v27, %s2291_s28 }
 0x668   : > { %1533 = vrot.lane.b32.xlu0 %v2472_v10, %s2292_s21 }
 0x6d6   : > { %v1530_v28 = vpop.permute.xlu0 %1529 }
 0x6d7   : > { %v1532_v31 = vmul.f32 %v1530_v28, %v1527_v29 }
 0x6da   : > { %v1534_v30 = vpop.permute.xlu0 %1533 }
 0x6db   : > { %v1536_v32 = vmul.f32 %v2202_v18, %v1534_v30 }
 0x6dd   : > { %v1537_v33 = vadd.f32 %v1536_v32, %v1532_v31 }
 0x6df   : > { %1621 = vrot.lane.b32.xlu1 %v1537_v33, %s2291_s28 }
 0x751   : > { %v1622_v36 = vpop.permute.xlu1 %1621 }
 0x752   : > { %1800 = vst.msk [vmem:[#allocation3] sm:$0xf] %vm1799_vm4, %v1622_v36  ;;  %2061 = vmatmul.mubr.msk.f32.vlgmr.msra.gmra.mrb[6].mxu1 %vm628_vm3, %v1622_v36  ;;  %vm1776_vm3 = vcmask 76800  }
 0x753   : > { %2121 = vmatpush3.bf16.msra.mxu1 %v2120_v5  ;;  %2067 = vmatprep.mubr.msk.f32.mxu1 %vm2285_vm2, %v2286_v8  ;;  %v1781_v8 = vcvt.s32.f32 %v2504_v51 }
 0x756   : > { %2068 = vmatmul.mubr.msk.f32.vlgmr.msra.gmra.mrb[8].mxu1 %vm1346_vm0, %v2552_v60 }
 0x825   : > { %v1691_v10 = vpop.f32.mrb[6].mxu1 }
 0x826   : > { %v1692_v37 = vadd.f32 %v1691_v10, %v1616_v4  ;;  %v2062_v38 = vpop.f32.mrb[7].mxu1 }
 0x829   : > { %v1763_v39 = vpop.f32.mrb[8].mxu1 }
 0x82a   : > { %v1767_v41 = vadd.f32 %v1763_v39, %v1692_v37  ;;  %v2069_v42 = vpop.f32.mrb[9].mxu1 }
 0x82c   : > { %v1775_v43 = vadd.f32 %v1903_v40, %v1767_v41 }
 0x82e   : > { %v1778_v44 = vsel %vm1776_vm3, %v1775_v43, -inf  ;;  %1777 = vst.msk [vmem:[%s2794_s19] sm:$0xf] %vm1776_vm3, %v1775_v43  ;;  %s2293_s19 = smov [#allocation6]  }
 0x82f   : > { %1779 = vmax.xlane.f32.xlu0 %v1778_v44  ;;  %s2221_s3 = sshll.u32 %s2293_s19, 4  ;;  %s2222_s3 = int_to_ptr.vmem [resolvable:$false] %s2221_s3 }
 0x830   : > { %s2223_s4 = scalar_lea.vmem %s2222_s3, 128  ;;  %p2224_p6 = scmp.lt.s32.totalorder %s1816_s1, %s2222_s3 }
 0x831   : > { %p2225_p7 = scmp.lt.s32.totalorder %s2223_s4, %s2217_s27 }
 0x833   : > { %p2226_p8 = por %p2225_p7, %p2224_p6 }
 0x835   : > { %p2227_p9 = pnand %p2226_p8, %p2220_p5 }
 0x8bc   : > { %v1780_v60 = vpop.xlane.xlu0 %1779 }
 0x8bd   : > { %vm1782_vm2 = vcmp.eq.f32.partialorder %v1775_v43, %v1780_v60 }
 0x8be   : > { %v1783_v45 = vsel %vm1782_vm2, %v1781_v8, 10.0 }
 0x8bf   : > { %v1784_v46 = vsel %vm1776_vm3, %v1783_v45, inf }
 0x8c0   : > { %1785 = vmin.xlane.f32.xlu1 %v1784_v46 }
 0x8c1   : > { %2230 = shalt.err (!%p2227_p9)
}
 0x8c2   : > { %s2231_s26 = scalar_lea.hbm %s2711_s2, 64  ;;  %s2235_s21 = scalar_lea.hbm %s2770_s17, 320 }
 0x8c3   : > { %p2232_p12 = scmp.ne.s32.totalorder %s2711_s2, %s2231_s26  ;;  %p2236_p1 = scmp.lt.u32.totalorder %s2711_s2, %s2770_s17 }
 0x8c4   : > { %p2237_p2 = scmp.lt.u32.totalorder %s2235_s21, %s2231_s26  ;;  %p2239_p4 = scmp.lt.u32.totalorder %s2231_s26, %s2711_s2 }
 0x8c5   : > { %p2233_p13 = pnand %p2232_p12, %p2425_p10 }
 0x8c6   : > { %p2238_p3 = por %p2237_p2, %p2236_p1 }
 0x8c7   : > { %p2234_p0 = pneg %p2233_p13 }
 0x8c8   : > { %p2240_p5 = por %p2239_p4, %p2238_p3 }
 0x8ca   : > { %p2241_p6 = pnand %p2240_p5, %p2234_p0 }
 0x8cc   : > { %2244 = shalt.err (!%p2241_p6)
}
 0x8cd   : > { %2124 = dma.vmem_to_hbm [thread:$0]  (%p2425_p10), %s1816_s1, 64, %s2711_s2, %s1802_s25   ;;  %v1789_v51 = vld [vmem:[%s2445_s22] sm:$0xf]  ;;  %vm1796_vm5 = vcmask 3072  }
 0x8ce   : > { %s1788_s4 = sld [smem:[#allocation5 + %s2408_s10]] }
 0x8d4   : > { %s1792_s24 = ssub.s32 1, %s1788_s4  ;;  %v1790_v47 = vstv %s1788_s4 }
 0x8d5   : > { %v1793_v50 = vstv %s1792_s24  ;;  %v1791_v52 = vmul.u32 %v1790_v47, %v1789_v51 }
 0x94d   : > { %v1786_v48 = vpop.xlane.xlu1 %1785 }
 0x94e   : > { %v2122_v49 = vtrunc.f32 %v1786_v48 }
 0x950   : > { %v2123_v54 = vcvt.f32.s32 %v2122_v49 }
 0x952   : > { %v1794_v55 = vmul.u32 %v2123_v54, %v1793_v50 }
 0x954   : > { %v1795_v56 = vadd.s32 %v1794_v55, %v1791_v52 }
 0x956   : > { %1797 = vst.msk [vmem:[#allocation2] sm:$0xf] %vm1796_vm5, %v1795_v56 }
 0x957 PF: > { %p2130_p7 = scmp.ge.s32.totalorder %s2281_s18, 2  ;;  %s1827_s27 = sand.u32 1, %s2269_s29  }
 0x958   : > { %s1828_s10 = scalar_lea.sflag [#allocation7], %s1827_s27 }
 0x959   : > { %p2127_p10 = pnand %p2130_p7, %p2429_p11 }
 0x95b   : > { %2264 = dma.done.wait (!%p2127_p10), %s1828_s10, 64  }
 0x95c   : > { %2266 = vsyncadd (!%p2127_p10), %s1828_s10, 4294967232  ;;  %s2798_s18 = sld [smem:[#allocation11_spill]]  ;;  %s2799_s22 = sld [smem:[#allocation10_spill]] }
 0x95d   : > { %s2800_s30 = sld [smem:[#allocation12_spill]]  ;;  %s2801_s29 = smov %s2273_s0 }
 0x962   : > { %p33_p8 = scmp.ge.s32.totalorder %s2798_s18, 7   ;;  %s2802_s0 = smov %s2799_s22 }
 0x964   :  { %35 = sbr.rel (!%p33_p8) target bundleno = 25 (0x19), region = 123 }
 0x96b   :  { %1833 = vsyncpa [#allocation7], 1 }
 0x96c   :  { %1835 = vsyncpa [#allocation7 + $0x1], 1 }

</bundles_post_ra>
